<compile_context>
chip_gen: v7x
topology: tpu7x:2x2x1
jax: 0.10.0
libtpu: 0.0.40
codegen_flags: <defaults>
</compile_context>

<pallas_src>
import functools

import jax
import jax.numpy as jnp
import numpy as np
from jax.experimental import pallas as pl
from jax.experimental.pallas import tpu as pltpu

_EPS = 1e-5  # nn.BatchNorm2d default


def _band_weight(w_hwio, W):
    """(3, 3, Cin, Cout) HWIO -> (3, W*Cin, W*Cout) block-banded weights.

    bw[dh][p*Cin + c, w*Cout + o] = w_hwio[dh, p - w + 1, c, o] if |p - w| <= 1
    else 0, i.e. the 3 taps along W (with implicit zero padding) become a
    single lane-dense matmul per kernel row dh.
    """
    kh, kw, cin, cout = w_hwio.shape
    bands = []
    for dh in range(kh):
        acc = jnp.zeros((W * cin, W * cout), w_hwio.dtype)
        for dw in range(kw):
            off = dw - 1                      # input col = output col + off
            k = W - abs(off)
            sel = jnp.zeros((W, W), w_hwio.dtype)
            if off >= 0:
                sel = sel.at[off:off + k, :k].set(jnp.eye(k, dtype=w_hwio.dtype))
            else:
                sel = sel.at[:k, -off:-off + k].set(jnp.eye(k, dtype=w_hwio.dtype))
            acc = acc + jnp.kron(sel, w_hwio[dh, dw])
        bands.append(acc)
    return jnp.stack(bands)                   # (3, W*Cin, W*Cout)


def _images_per_step(N):
    # Pack as many images as possible per grid step (maximizes MXU M = nb*H)
    # while keeping >= 2 parallel grid steps when N allows, so both v7x
    # TensorCores get work.  TODO(synk): collapse to a single step (nb=N) when
    # the chip is known to be single-TC (v5e/v6e), and cap nb by VMEM at scale.
    return N // 2 if (N % 2 == 0 and N >= 2) else N


def _fused_bn_relu_conv_kernel(*refs, nb, H, W, cin, cout,
                               add_residual, emit_stats):
    """BN(pre-folded affine) -> ReLU -> 3x3 conv (pad=1, stride=1) [+res] [+stats]."""
    it = iter(refs)
    x_ref = next(it)                              # (nb, H, W*cin)      f32/bf16
    s_ref = next(it)                              # (1, 1, W*cin)       f32
    b_ref = next(it)                              # (1, 1, W*cin)       f32
    w_ref = next(it)                              # (3, W*cin, W*cout)  bf16
    res_ref = next(it) if add_residual else None  # (nb, H, W*cout)     f32
    o_ref = next(it)                              # (nb, H, W*cout)
    sum_ref = next(it) if emit_stats else None    # (1, 1, W*cout)      f32
    sq_ref = next(it) if emit_stats else None     # (1, 1, W*cout)      f32

    wci = W * cin
    wco = W * cout
    M = nb * H

    # BN (folded per-channel affine tiled over the W*cin lane axis) + ReLU in
    # f32; ONE bf16 cast of the activation feeds all three MXU matmuls.
    act = jnp.maximum(x_ref[...].astype(jnp.float32) * s_ref[...] + b_ref[...],
                      0.0)                                     # (nb, H, wci)
    act_bf = act.reshape(M, wci).astype(jnp.bfloat16)          # single cast

    # Row index within each image: used to zero the rows that correspond to
    # the implicit H-padding (and to kill roll wrap-around between images).
    row = jax.lax.broadcasted_iota(jnp.int32, (M, 1), 0) % H

    # out[h] = act[h-1] @ band0 + act[h] @ band1 + act[h+1] @ band2
    # (zero contribution at the image's H borders).  The row shift and the
    # border mask are applied to the f32 matmul results, so there is no padded
    # scratch, no misaligned sublane store and no per-tap bf16 re-cast.
    acc = jnp.dot(act_bf, w_ref[1], preferred_element_type=jnp.float32)   # dh=1

    y0 = jnp.dot(act_bf, w_ref[0], preferred_element_type=jnp.float32)    # dh=0
    y0 = pltpu.roll(y0, shift=1, axis=0)          # y0[h] <- (act @ band0)[h-1]
    acc = acc + jnp.where(row == 0, 0.0, y0)

    y2 = jnp.dot(act_bf, w_ref[2], preferred_element_type=jnp.float32)    # dh=2
    y2 = pltpu.roll(y2, shift=M - 1, axis=0)      # roll by -1 (kept non-negative)
    acc = acc + jnp.where(row == H - 1, 0.0, y2)

    if emit_stats:
        # Partial batch statistics of the conv output (for the next BatchNorm),
        # computed from the f32 accumulator before any downcast.
        sum_ref[...] = jnp.sum(acc, axis=0, keepdims=True).reshape(1, 1, wco)
        sq_ref[...] = jnp.sum(acc * acc, axis=0, keepdims=True).reshape(1, 1, wco)

    if add_residual:
        acc = acc + res_ref[...].reshape(M, wco)

    o_ref[...] = acc.reshape(nb, H, wco).astype(o_ref.dtype)


def _fused_bn_relu_conv(x, scale, bias, w_hwio, *, W, residual=None,
                        emit_stats=False, out_dtype=jnp.float32):
    """Pallas call: fused bn -> relu -> conv3x3 [-> +residual] [-> batch stats].

    x: (N, H, W*Cin) lane-dense activation; returns (N, H, W*Cout) [+ stats].
    """
    N, H, wci = x.shape
    cin, cout = w_hwio.shape[2], w_hwio.shape[3]
    assert wci == W * cin
    wco = W * cout
    nb = _images_per_step(N)
    G = N // nb
    add_residual = residual is not None

    s2 = jnp.tile(scale.astype(jnp.float32), W).reshape(1, 1, wci)
    b2 = jnp.tile(bias.astype(jnp.float32), W).reshape(1, 1, wci)
    bw = _band_weight(w_hwio, W).astype(jnp.bfloat16)   # bf16 MXU operands

    kernel = functools.partial(
        _fused_bn_relu_conv_kernel, nb=nb, H=H, W=W, cin=cin, cout=cout,
        add_residual=add_residual, emit_stats=emit_stats)

    in_specs = [
        pl.BlockSpec((nb, H, wci), lambda n: (n, 0, 0)),
        pl.BlockSpec((1, 1, wci), lambda n: (0, 0, 0)),
        pl.BlockSpec((1, 1, wci), lambda n: (0, 0, 0)),
        # Constant-index weight band.  TODO(synk): single-buffer it
        # (pipeline_mode=pl.Buffered(1)) once W/Cout tiling is added at scale.
        pl.BlockSpec((3, wci, wco), lambda n: (0, 0, 0)),
    ]
    inputs = [x, s2, b2, bw]
    if add_residual:
        in_specs.append(pl.BlockSpec((nb, H, wco), lambda n: (n, 0, 0)))
        inputs.append(residual)

    out_shape = [jax.ShapeDtypeStruct((N, H, wco), out_dtype)]
    out_specs = [pl.BlockSpec((nb, H, wco), lambda n: (n, 0, 0))]
    if emit_stats:
        out_shape += [jax.ShapeDtypeStruct((G, 1, wco), jnp.float32)] * 2
        out_specs += [pl.BlockSpec((1, 1, wco), lambda n: (n, 0, 0))] * 2

    outs = pl.pallas_call(
        kernel,
        out_shape=tuple(out_shape),
        grid_spec=pltpu.PrefetchScalarGridSpec(
            num_scalar_prefetch=0,
            grid=(G,),
            in_specs=in_specs,
            out_specs=tuple(out_specs),
        ),
        compiler_params=pltpu.CompilerParams(
            dimension_semantics=("parallel",)),
    )(*inputs)

    if emit_stats:
        out, psum, psq = outs
        count = float(N * H * W)
        s = psum.sum(axis=(0, 1)).reshape(W, cout).sum(axis=0)
        sq = psq.sum(axis=(0, 1)).reshape(W, cout).sum(axis=0)
        mean = s / count
        var = sq / count - mean * mean          # biased; clamped in _fold_bn
        return out, (mean, var)
    return outs[0]


def _fold_bn(gamma, beta, mean, var, eps=_EPS):
    var = jnp.maximum(var, 0.0)                 # guard E[x^2]-E[x]^2 cancellation
    scale = gamma / jnp.sqrt(var + eps)
    return scale, beta - mean * scale


@jax.jit
def basic_block_forward(x_nchw, params):
    """Pallas implementation of BasicBlock.forward (NCHW in, NCHW out)."""
    N, C, H, W = x_nchw.shape

    # BN1 batch statistics (training-mode, biased variance) straight off the
    # NCHW input; the NHWC relayout runs in parallel with it.
    m1 = jnp.mean(x_nchw, axis=(0, 2, 3))
    v1 = jnp.mean(x_nchw * x_nchw, axis=(0, 2, 3)) - m1 * m1
    s1, b1 = _fold_bn(params["gamma1"], params["beta1"], m1, v1)

    # Lane-dense NHWC view: (N, H, W*C).
    x = jnp.transpose(x_nchw, (0, 2, 3, 1)).reshape(N, H, W * C)

    # conv1(relu(bn1(x))); emits BN2 batch statistics in the same pass and
    # stores out1 in bf16 (kernel 2 casts it for the MXU anyway).
    out1, (m2, v2) = _fused_bn_relu_conv(x, s1, b1, params["w1"], W=W,
                                         emit_stats=True,
                                         out_dtype=jnp.bfloat16)

    s2, b2 = _fold_bn(params["gamma2"], params["beta2"], m2, v2)
    out = _fused_bn_relu_conv(out1, s2, b2, params["w2"], W=W, residual=x)

    out = out.reshape(N, H, W, C)
    return jnp.transpose(out, (0, 3, 1, 2))     # NHWC -> NCHW


# ------------------------- pure-JAX reference -------------------------------

def _conv3x3_ref(x_nhwc, w_hwio):
    return jax.lax.conv_general_dilated(
        x_nhwc, w_hwio, window_strides=(1, 1), padding="SAME",
        dimension_numbers=("NHWC", "HWIO", "NHWC"),
        precision=jax.lax.Precision.HIGHEST)


def _batch_stats(x_nhwc):
    mean = jnp.mean(x_nhwc, axis=(0, 1, 2))
    var = jnp.mean((x_nhwc - mean) ** 2, axis=(0, 1, 2))
    return mean, var


def reference_forward(x_nchw, params):
    x = jnp.transpose(x_nchw, (0, 2, 3, 1))
    m1, v1 = _batch_stats(x)
    relu1 = jnp.maximum(
        (x - m1) / jnp.sqrt(v1 + _EPS) * params["gamma1"] + params["beta1"], 0.0)
    out1 = _conv3x3_ref(relu1, params["w1"])
    m2, v2 = _batch_stats(out1)
    relu2 = jnp.maximum(
        (out1 - m2) / jnp.sqrt(v2 + _EPS) * params["gamma2"] + params["beta2"], 0.0)
    out = _conv3x3_ref(relu2, params["w2"]) + x
    return jnp.transpose(out, (0, 3, 1, 2))


# ------------------------------- main ----------------------------------------

if __name__ == "__main__":
    key = jax.random.PRNGKey(0)
    # identity-skip case: inplanes == planes, stride=1; W*C = 256 (lane dense),
    # nb = N/2 = 8 images per grid step -> MXU M = nb*H = 64, grid G = 2.
    N, C, H, W = 16, 32, 8, 8
    k1, k2, k3, k4, k5, k6, k7 = jax.random.split(key, 7)

    x = jax.random.normal(k1, (N, C, H, W), jnp.float32)   # NCHW, like PyTorch
    fan_in = 9 * C
    params = {
        # conv weights in HWIO (= torch (O,I,3,3) transposed (2,3,1,0))
        "w1": jax.random.normal(k2, (3, 3, C, C), jnp.float32) * (2.0 / fan_in) ** 0.5,
        "w2": jax.random.normal(k3, (3, 3, C, C), jnp.float32) * (2.0 / fan_in) ** 0.5,
        "gamma1": 1.0 + 0.1 * jax.random.normal(k4, (C,), jnp.float32),
        "beta1": 0.1 * jax.random.normal(k5, (C,), jnp.float32),
        "gamma2": 1.0 + 0.1 * jax.random.normal(k6, (C,), jnp.float32),
        "beta2": 0.1 * jax.random.normal(k7, (C,), jnp.float32),
    }

    out = jax.block_until_ready(basic_block_forward(x, params))
    ref = jax.block_until_ready(reference_forward(x, params))

    assert out.shape == (N, C, H, W) and out.dtype == jnp.float32
    # bf16 MXU operands + bf16 out1 storage (f32 accumulation everywhere)
    # -> slightly looser tolerance than an all-f32 reference.
    np.testing.assert_allclose(np.asarray(out), np.asarray(ref),
                               rtol=2e-2, atol=3e-2)
    print("KERNEL_OK")
</pallas_src>

<mosaic_0001>
module attributes {stable_mosaic.version = 11 : i64} {
  func.func @_fused_bn_relu_conv_kernel(%arg0: i32, %arg1: memref<8x8x256xf32, #tpu.memory_space<vmem>>, %arg2: memref<1x1x256xf32, #tpu.memory_space<vmem>>, %arg3: memref<1x1x256xf32, #tpu.memory_space<vmem>>, %arg4: memref<3x256x256xbf16, #tpu.memory_space<vmem>>, %arg5: memref<8x8x256xbf16, #tpu.memory_space<vmem>>, %arg6: memref<1x1x256xf32, #tpu.memory_space<vmem>>, %arg7: memref<1x1x256xf32, #tpu.memory_space<vmem>>) attributes {dimension_semantics = [#tpu.dimension_semantics<parallel>], iteration_bounds = array<i64: 2>, scalar_prefetch = 0 : i64, scratch_operands = 0 : i64, tpu.core_type = #tpu.core_type<tc>, window_params = [{transform_indices = @transform_0, window_bounds = array<i64: 8, 8, 256>}, {pipeline_mode = #tpu.pipeline_mode<synchronous>, transform_indices = @transform_1, window_bounds = array<i64: 1, 1, 256>}, {pipeline_mode = #tpu.pipeline_mode<synchronous>, transform_indices = @transform_2, window_bounds = array<i64: 1, 1, 256>}, {pipeline_mode = #tpu.pipeline_mode<synchronous>, transform_indices = @transform_3, window_bounds = array<i64: 3, 256, 256>}, {transform_indices = @transform_4, window_bounds = array<i64: 8, 8, 256>}, {transform_indices = @transform_5, window_bounds = array<i64: 1, 1, 256>}, {transform_indices = @transform_6, window_bounds = array<i64: 1, 1, 256>}]} {
    %c0 = arith.constant 0 : index
    %c0_0 = arith.constant 0 : index
    %c0_1 = arith.constant 0 : index
    %0 = vector.load %arg1[%c0, %c0_0, %c0_1] : memref<8x8x256xf32, #tpu.memory_space<vmem>>, vector<8x8x256xf32>
    %c0_2 = arith.constant 0 : index
    %c0_3 = arith.constant 0 : index
    %c0_4 = arith.constant 0 : index
    %1 = vector.load %arg2[%c0_2, %c0_3, %c0_4] : memref<1x1x256xf32, #tpu.memory_space<vmem>>, vector<1x1x256xf32>
    %2 = vector.broadcast %1 : vector<1x1x256xf32> to vector<8x8x256xf32>
    %3 = arith.mulf %0, %2 : vector<8x8x256xf32>
    %c0_5 = arith.constant 0 : index
    %c0_6 = arith.constant 0 : index
    %c0_7 = arith.constant 0 : index
    %4 = vector.load %arg3[%c0_5, %c0_6, %c0_7] : memref<1x1x256xf32, #tpu.memory_space<vmem>>, vector<1x1x256xf32>
    %5 = vector.broadcast %4 : vector<1x1x256xf32> to vector<8x8x256xf32>
    %6 = arith.addf %3, %5 : vector<8x8x256xf32>
    %cst = arith.constant 0.000000e+00 : f32
    %7 = vector.broadcast %cst : f32 to vector<8x8x256xf32>
    %8 = arith.maximumf %6, %7 : vector<8x8x256xf32>
    %9 = vector.shape_cast %8 : vector<8x8x256xf32> to vector<64x256xf32>
    %10 = arith.truncf %9 : vector<64x256xf32> to vector<64x256xbf16>
    %11 = tpu.iota {dimensions = array<i32: 0>} : vector<64x1xi32>
    %c8_i32 = arith.constant 8 : i32
    %c0_i32 = arith.constant 0 : i32
    %12 = arith.cmpi eq, %c8_i32, %c0_i32 : i32
    %c1_i32 = arith.constant 1 : i32
    %13 = arith.select %12, %c1_i32, %c8_i32 : i32
    %14 = vector.broadcast %13 : i32 to vector<64x1xi32>
    %15 = arith.remsi %11, %14 : vector<64x1xi32>
    %c0_i32_8 = arith.constant 0 : i32
    %16 = vector.broadcast %c0_i32_8 : i32 to vector<64x1xi32>
    %17 = arith.cmpi ne, %15, %16 : vector<64x1xi32>
    %c0_i32_9 = arith.constant 0 : i32
    %18 = vector.broadcast %c0_i32_9 : i32 to vector<64x1xi32>
    %19 = arith.cmpi slt, %15, %18 : vector<64x1xi32>
    %c0_i32_10 = arith.constant 0 : i32
    %20 = arith.cmpi slt, %13, %c0_i32_10 : i32
    %21 = vector.broadcast %20 : i1 to vector<64x1xi1>
    %22 = vector.broadcast %21 : vector<64x1xi1> to vector<64x1xi1>
    %23 = arith.xori %19, %22 : vector<64x1xi1>
    %24 = arith.andi %23, %17 : vector<64x1xi1>
    %25 = vector.broadcast %13 : i32 to vector<64x1xi32>
    %26 = arith.addi %15, %25 : vector<64x1xi32>
    %27 = arith.select %24, %26, %15 : vector<64x1xi1>, vector<64x1xi32>
    %c1 = arith.constant 1 : index
    %c0_11 = arith.constant 0 : index
    %c0_12 = arith.constant 0 : index
    %28 = vector.load %arg4[%c1, %c0_11, %c0_12] : memref<3x256x256xbf16, #tpu.memory_space<vmem>>, vector<1x256x256xbf16>
    %29 = vector.shape_cast %28 : vector<1x256x256xbf16> to vector<256x256xbf16>
    %cst_13 = arith.constant dense<0.000000e+00> : vector<64x256xf32>
    %30 = tpu.matmul %10, %29, %cst_13 {dimension_numbers = #tpu.dot_dimension_numbers<[1], [0], [0], [1], [0, 0, 1, 1], [], []>} : vector<64x256xbf16>, vector<256x256xbf16>, vector<64x256xf32> -> vector<64x256xf32>
    %c0_14 = arith.constant 0 : index
    %c0_15 = arith.constant 0 : index
    %c0_16 = arith.constant 0 : index
    %31 = vector.load %arg4[%c0_14, %c0_15, %c0_16] : memref<3x256x256xbf16, #tpu.memory_space<vmem>>, vector<1x256x256xbf16>
    %32 = vector.shape_cast %31 : vector<1x256x256xbf16> to vector<256x256xbf16>
    %cst_17 = arith.constant dense<0.000000e+00> : vector<64x256xf32>
    %33 = tpu.matmul %10, %32, %cst_17 {dimension_numbers = #tpu.dot_dimension_numbers<[1], [0], [0], [1], [0, 0, 1, 1], [], []>} : vector<64x256xbf16>, vector<256x256xbf16>, vector<64x256xf32> -> vector<64x256xf32>
    %c1_i32_18 = arith.constant 1 : i32
    %34 = tpu.dynamic_rotate %33 by %c1_i32_18 dim 0 : vector<64x256xf32>, i32 -> vector<64x256xf32>
    %c0_i32_19 = arith.constant 0 : i32
    %35 = vector.broadcast %c0_i32_19 : i32 to vector<64x1xi32>
    %36 = arith.cmpi eq, %27, %35 : vector<64x1xi32>
    %cst_20 = arith.constant 0.000000e+00 : f32
    %37 = vector.shape_cast %36 : vector<64x1xi1> to vector<64x1xi1>
    %38 = vector.broadcast %37 : vector<64x1xi1> to vector<64x256xi1>
    %39 = vector.broadcast %cst_20 : f32 to vector<64x256xf32>
    %40 = arith.select %38, %39, %34 : vector<64x256xi1>, vector<64x256xf32>
    %41 = arith.addf %30, %40 : vector<64x256xf32>
    %c2 = arith.constant 2 : index
    %c0_21 = arith.constant 0 : index
    %c0_22 = arith.constant 0 : index
    %42 = vector.load %arg4[%c2, %c0_21, %c0_22] : memref<3x256x256xbf16, #tpu.memory_space<vmem>>, vector<1x256x256xbf16>
    %43 = vector.shape_cast %42 : vector<1x256x256xbf16> to vector<256x256xbf16>
    %cst_23 = arith.constant dense<0.000000e+00> : vector<64x256xf32>
    %44 = tpu.matmul %10, %43, %cst_23 {dimension_numbers = #tpu.dot_dimension_numbers<[1], [0], [0], [1], [0, 0, 1, 1], [], []>} : vector<64x256xbf16>, vector<256x256xbf16>, vector<64x256xf32> -> vector<64x256xf32>
    %c63_i32 = arith.constant 63 : i32
    %45 = tpu.dynamic_rotate %44 by %c63_i32 dim 0 : vector<64x256xf32>, i32 -> vector<64x256xf32>
    %c7_i32 = arith.constant 7 : i32
    %46 = vector.broadcast %c7_i32 : i32 to vector<64x1xi32>
    %47 = arith.cmpi eq, %27, %46 : vector<64x1xi32>
    %cst_24 = arith.constant 0.000000e+00 : f32
    %48 = vector.shape_cast %47 : vector<64x1xi1> to vector<64x1xi1>
    %49 = vector.broadcast %48 : vector<64x1xi1> to vector<64x256xi1>
    %50 = vector.broadcast %cst_24 : f32 to vector<64x256xf32>
    %51 = arith.select %49, %50, %45 : vector<64x256xi1>, vector<64x256xf32>
    %52 = arith.addf %41, %51 : vector<64x256xf32>
    %cst_25 = arith.constant dense<0.000000e+00> : vector<256xf32>
    %53 = vector.multi_reduction <add>, %52, %cst_25 [0] : vector<64x256xf32> to vector<256xf32>
    %54 = vector.shape_cast %53 : vector<256xf32> to vector<1x256xf32>
    %55 = vector.shape_cast %54 : vector<1x256xf32> to vector<1x1x256xf32>
    %c0_26 = arith.constant 0 : index
    %c0_27 = arith.constant 0 : index
    %c0_28 = arith.constant 0 : index
    %56 = vector.load %arg6[%c0_26, %c0_27, %c0_28] : memref<1x1x256xf32, #tpu.memory_space<vmem>>, vector<1x1x256xf32>
    tpu.vector_store %arg6[%c0_26, %c0_27, %c0_28], %55 {strides = array<i32>} : memref<1x1x256xf32, #tpu.memory_space<vmem>>, vector<1x1x256xf32>,
    %57 = arith.mulf %52, %52 : vector<64x256xf32>
    %cst_29 = arith.constant dense<0.000000e+00> : vector<256xf32>
    %58 = vector.multi_reduction <add>, %57, %cst_29 [0] : vector<64x256xf32> to vector<256xf32>
    %59 = vector.shape_cast %58 : vector<256xf32> to vector<1x256xf32>
    %60 = vector.shape_cast %59 : vector<1x256xf32> to vector<1x1x256xf32>
    %c0_30 = arith.constant 0 : index
    %c0_31 = arith.constant 0 : index
    %c0_32 = arith.constant 0 : index
    %61 = vector.load %arg7[%c0_30, %c0_31, %c0_32] : memref<1x1x256xf32, #tpu.memory_space<vmem>>, vector<1x1x256xf32>
    tpu.vector_store %arg7[%c0_30, %c0_31, %c0_32], %60 {strides = array<i32>} : memref<1x1x256xf32, #tpu.memory_space<vmem>>, vector<1x1x256xf32>,
    %62 = vector.shape_cast %52 : vector<64x256xf32> to vector<8x8x256xf32>
    %63 = arith.truncf %62 : vector<8x8x256xf32> to vector<8x8x256xbf16>
    %c0_33 = arith.constant 0 : index
    %c0_34 = arith.constant 0 : index
    %c0_35 = arith.constant 0 : index
    %64 = vector.load %arg5[%c0_33, %c0_34, %c0_35] : memref<8x8x256xbf16, #tpu.memory_space<vmem>>, vector<8x8x256xbf16>
    tpu.vector_store %arg5[%c0_33, %c0_34, %c0_35], %63 {strides = array<i32>} : memref<8x8x256xbf16, #tpu.memory_space<vmem>>, vector<8x8x256xbf16>,
    return
  }
  func.func @transform_0(%arg0: i32) -> (i32, i32, i32) {
    %c0_i32 = arith.constant 0 : i32
    %c0_i32_0 = arith.constant 0 : i32
    %c0_i32_1 = arith.constant 0 : i32
    return %arg0, %c0_i32, %c0_i32_0 : i32, i32, i32
  }
  func.func @transform_1(%arg0: i32) -> (i32, i32, i32) {
    %c0_i32 = arith.constant 0 : i32
    %c0_i32_0 = arith.constant 0 : i32
    %c0_i32_1 = arith.constant 0 : i32
    %c0_i32_2 = arith.constant 0 : i32
    return %c0_i32, %c0_i32_0, %c0_i32_1 : i32, i32, i32
  }
  func.func @transform_2(%arg0: i32) -> (i32, i32, i32) {
    %c0_i32 = arith.constant 0 : i32
    %c0_i32_0 = arith.constant 0 : i32
    %c0_i32_1 = arith.constant 0 : i32
    %c0_i32_2 = arith.constant 0 : i32
    return %c0_i32, %c0_i32_0, %c0_i32_1 : i32, i32, i32
  }
  func.func @transform_3(%arg0: i32) -> (i32, i32, i32) {
    %c0_i32 = arith.constant 0 : i32
    %c0_i32_0 = arith.constant 0 : i32
    %c0_i32_1 = arith.constant 0 : i32
    %c0_i32_2 = arith.constant 0 : i32
    return %c0_i32, %c0_i32_0, %c0_i32_1 : i32, i32, i32
  }
  func.func @transform_4(%arg0: i32) -> (i32, i32, i32) {
    %c0_i32 = arith.constant 0 : i32
    %c0_i32_0 = arith.constant 0 : i32
    %c0_i32_1 = arith.constant 0 : i32
    return %arg0, %c0_i32, %c0_i32_0 : i32, i32, i32
  }
  func.func @transform_5(%arg0: i32) -> (i32, i32, i32) {
    %c0_i32 = arith.constant 0 : i32
    %c0_i32_0 = arith.constant 0 : i32
    %c0_i32_1 = arith.constant 0 : i32
    return %arg0, %c0_i32, %c0_i32_0 : i32, i32, i32
  }
  func.func @transform_6(%arg0: i32) -> (i32, i32, i32) {
    %c0_i32 = arith.constant 0 : i32
    %c0_i32_0 = arith.constant 0 : i32
    %c0_i32_1 = arith.constant 0 : i32
    return %arg0, %c0_i32, %c0_i32_0 : i32, i32, i32
  }
}

module attributes {stable_mosaic.version = 11 : i64} {
  func.func @_fused_bn_relu_conv_kernel(%arg0: i32, %arg1: memref<8x8x256xbf16, #tpu.memory_space<vmem>>, %arg2: memref<1x1x256xf32, #tpu.memory_space<vmem>>, %arg3: memref<1x1x256xf32, #tpu.memory_space<vmem>>, %arg4: memref<3x256x256xbf16, #tpu.memory_space<vmem>>, %arg5: memref<8x8x256xf32, #tpu.memory_space<vmem>>, %arg6: memref<8x8x256xf32, #tpu.memory_space<vmem>>) attributes {dimension_semantics = [#tpu.dimension_semantics<parallel>], iteration_bounds = array<i64: 2>, scalar_prefetch = 0 : i64, scratch_operands = 0 : i64, tpu.core_type = #tpu.core_type<tc>, window_params = [{transform_indices = @transform_0, window_bounds = array<i64: 8, 8, 256>}, {pipeline_mode = #tpu.pipeline_mode<synchronous>, transform_indices = @transform_1, window_bounds = array<i64: 1, 1, 256>}, {pipeline_mode = #tpu.pipeline_mode<synchronous>, transform_indices = @transform_2, window_bounds = array<i64: 1, 1, 256>}, {pipeline_mode = #tpu.pipeline_mode<synchronous>, transform_indices = @transform_3, window_bounds = array<i64: 3, 256, 256>}, {transform_indices = @transform_4, window_bounds = array<i64: 8, 8, 256>}, {transform_indices = @transform_5, window_bounds = array<i64: 8, 8, 256>}]} {
    %c0 = arith.constant 0 : index
    %c0_0 = arith.constant 0 : index
    %c0_1 = arith.constant 0 : index
    %0 = vector.load %arg1[%c0, %c0_0, %c0_1] : memref<8x8x256xbf16, #tpu.memory_space<vmem>>, vector<8x8x256xbf16>
    %1 = arith.extf %0 : vector<8x8x256xbf16> to vector<8x8x256xf32>
    %c0_2 = arith.constant 0 : index
    %c0_3 = arith.constant 0 : index
    %c0_4 = arith.constant 0 : index
    %2 = vector.load %arg2[%c0_2, %c0_3, %c0_4] : memref<1x1x256xf32, #tpu.memory_space<vmem>>, vector<1x1x256xf32>
    %3 = vector.broadcast %2 : vector<1x1x256xf32> to vector<8x8x256xf32>
    %4 = arith.mulf %1, %3 : vector<8x8x256xf32>
    %c0_5 = arith.constant 0 : index
    %c0_6 = arith.constant 0 : index
    %c0_7 = arith.constant 0 : index
    %5 = vector.load %arg3[%c0_5, %c0_6, %c0_7] : memref<1x1x256xf32, #tpu.memory_space<vmem>>, vector<1x1x256xf32>
    %6 = vector.broadcast %5 : vector<1x1x256xf32> to vector<8x8x256xf32>
    %7 = arith.addf %4, %6 : vector<8x8x256xf32>
    %cst = arith.constant 0.000000e+00 : f32
    %8 = vector.broadcast %cst : f32 to vector<8x8x256xf32>
    %9 = arith.maximumf %7, %8 : vector<8x8x256xf32>
    %10 = vector.shape_cast %9 : vector<8x8x256xf32> to vector<64x256xf32>
    %11 = arith.truncf %10 : vector<64x256xf32> to vector<64x256xbf16>
    %12 = tpu.iota {dimensions = array<i32: 0>} : vector<64x1xi32>
    %c8_i32 = arith.constant 8 : i32
    %c0_i32 = arith.constant 0 : i32
    %13 = arith.cmpi eq, %c8_i32, %c0_i32 : i32
    %c1_i32 = arith.constant 1 : i32
    %14 = arith.select %13, %c1_i32, %c8_i32 : i32
    %15 = vector.broadcast %14 : i32 to vector<64x1xi32>
    %16 = arith.remsi %12, %15 : vector<64x1xi32>
    %c0_i32_8 = arith.constant 0 : i32
    %17 = vector.broadcast %c0_i32_8 : i32 to vector<64x1xi32>
    %18 = arith.cmpi ne, %16, %17 : vector<64x1xi32>
    %c0_i32_9 = arith.constant 0 : i32
    %19 = vector.broadcast %c0_i32_9 : i32 to vector<64x1xi32>
    %20 = arith.cmpi slt, %16, %19 : vector<64x1xi32>
    %c0_i32_10 = arith.constant 0 : i32
    %21 = arith.cmpi slt, %14, %c0_i32_10 : i32
    %22 = vector.broadcast %21 : i1 to vector<64x1xi1>
    %23 = vector.broadcast %22 : vector<64x1xi1> to vector<64x1xi1>
    %24 = arith.xori %20, %23 : vector<64x1xi1>
    %25 = arith.andi %24, %18 : vector<64x1xi1>
    %26 = vector.broadcast %14 : i32 to vector<64x1xi32>
    %27 = arith.addi %16, %26 : vector<64x1xi32>
    %28 = arith.select %25, %27, %16 : vector<64x1xi1>, vector<64x1xi32>
    %c1 = arith.constant 1 : index
    %c0_11 = arith.constant 0 : index
    %c0_12 = arith.constant 0 : index
    %29 = vector.load %arg4[%c1, %c0_11, %c0_12] : memref<3x256x256xbf16, #tpu.memory_space<vmem>>, vector<1x256x256xbf16>
    %30 = vector.shape_cast %29 : vector<1x256x256xbf16> to vector<256x256xbf16>
    %cst_13 = arith.constant dense<0.000000e+00> : vector<64x256xf32>
    %31 = tpu.matmul %11, %30, %cst_13 {dimension_numbers = #tpu.dot_dimension_numbers<[1], [0], [0], [1], [0, 0, 1, 1], [], []>} : vector<64x256xbf16>, vector<256x256xbf16>, vector<64x256xf32> -> vector<64x256xf32>
    %c0_14 = arith.constant 0 : index
    %c0_15 = arith.constant 0 : index
    %c0_16 = arith.constant 0 : index
    %32 = vector.load %arg4[%c0_14, %c0_15, %c0_16] : memref<3x256x256xbf16, #tpu.memory_space<vmem>>, vector<1x256x256xbf16>
    %33 = vector.shape_cast %32 : vector<1x256x256xbf16> to vector<256x256xbf16>
    %cst_17 = arith.constant dense<0.000000e+00> : vector<64x256xf32>
    %34 = tpu.matmul %11, %33, %cst_17 {dimension_numbers = #tpu.dot_dimension_numbers<[1], [0], [0], [1], [0, 0, 1, 1], [], []>} : vector<64x256xbf16>, vector<256x256xbf16>, vector<64x256xf32> -> vector<64x256xf32>
    %c1_i32_18 = arith.constant 1 : i32
    %35 = tpu.dynamic_rotate %34 by %c1_i32_18 dim 0 : vector<64x256xf32>, i32 -> vector<64x256xf32>
    %c0_i32_19 = arith.constant 0 : i32
    %36 = vector.broadcast %c0_i32_19 : i32 to vector<64x1xi32>
    %37 = arith.cmpi eq, %28, %36 : vector<64x1xi32>
    %cst_20 = arith.constant 0.000000e+00 : f32
    %38 = vector.shape_cast %37 : vector<64x1xi1> to vector<64x1xi1>
    %39 = vector.broadcast %38 : vector<64x1xi1> to vector<64x256xi1>
    %40 = vector.broadcast %cst_20 : f32 to vector<64x256xf32>
    %41 = arith.select %39, %40, %35 : vector<64x256xi1>, vector<64x256xf32>
    %42 = arith.addf %31, %41 : vector<64x256xf32>
    %c2 = arith.constant 2 : index
    %c0_21 = arith.constant 0 : index
    %c0_22 = arith.constant 0 : index
    %43 = vector.load %arg4[%c2, %c0_21, %c0_22] : memref<3x256x256xbf16, #tpu.memory_space<vmem>>, vector<1x256x256xbf16>
    %44 = vector.shape_cast %43 : vector<1x256x256xbf16> to vector<256x256xbf16>
    %cst_23 = arith.constant dense<0.000000e+00> : vector<64x256xf32>
    %45 = tpu.matmul %11, %44, %cst_23 {dimension_numbers = #tpu.dot_dimension_numbers<[1], [0], [0], [1], [0, 0, 1, 1], [], []>} : vector<64x256xbf16>, vector<256x256xbf16>, vector<64x256xf32> -> vector<64x256xf32>
    %c63_i32 = arith.constant 63 : i32
    %46 = tpu.dynamic_rotate %45 by %c63_i32 dim 0 : vector<64x256xf32>, i32 -> vector<64x256xf32>
    %c7_i32 = arith.constant 7 : i32
    %47 = vector.broadcast %c7_i32 : i32 to vector<64x1xi32>
    %48 = arith.cmpi eq, %28, %47 : vector<64x1xi32>
    %cst_24 = arith.constant 0.000000e+00 : f32
    %49 = vector.shape_cast %48 : vector<64x1xi1> to vector<64x1xi1>
    %50 = vector.broadcast %49 : vector<64x1xi1> to vector<64x256xi1>
    %51 = vector.broadcast %cst_24 : f32 to vector<64x256xf32>
    %52 = arith.select %50, %51, %46 : vector<64x256xi1>, vector<64x256xf32>
    %53 = arith.addf %42, %52 : vector<64x256xf32>
    %c0_25 = arith.constant 0 : index
    %c0_26 = arith.constant 0 : index
    %c0_27 = arith.constant 0 : index
    %54 = vector.load %arg5[%c0_25, %c0_26, %c0_27] : memref<8x8x256xf32, #tpu.memory_space<vmem>>, vector<8x8x256xf32>
    %55 = vector.shape_cast %54 : vector<8x8x256xf32> to vector<64x256xf32>
    %56 = arith.addf %53, %55 : vector<64x256xf32>
    %57 = vector.shape_cast %56 : vector<64x256xf32> to vector<8x8x256xf32>
    %c0_28 = arith.constant 0 : index
    %c0_29 = arith.constant 0 : index
    %c0_30 = arith.constant 0 : index
    %58 = vector.load %arg6[%c0_28, %c0_29, %c0_30] : memref<8x8x256xf32, #tpu.memory_space<vmem>>, vector<8x8x256xf32>
    tpu.vector_store %arg6[%c0_28, %c0_29, %c0_30], %57 {strides = array<i32>} : memref<8x8x256xf32, #tpu.memory_space<vmem>>, vector<8x8x256xf32>,
    return
  }
  func.func @transform_0(%arg0: i32) -> (i32, i32, i32) {
    %c0_i32 = arith.constant 0 : i32
    %c0_i32_0 = arith.constant 0 : i32
    %c0_i32_1 = arith.constant 0 : i32
    return %arg0, %c0_i32, %c0_i32_0 : i32, i32, i32
  }
  func.func @transform_1(%arg0: i32) -> (i32, i32, i32) {
    %c0_i32 = arith.constant 0 : i32
    %c0_i32_0 = arith.constant 0 : i32
    %c0_i32_1 = arith.constant 0 : i32
    %c0_i32_2 = arith.constant 0 : i32
    return %c0_i32, %c0_i32_0, %c0_i32_1 : i32, i32, i32
  }
  func.func @transform_2(%arg0: i32) -> (i32, i32, i32) {
    %c0_i32 = arith.constant 0 : i32
    %c0_i32_0 = arith.constant 0 : i32
    %c0_i32_1 = arith.constant 0 : i32
    %c0_i32_2 = arith.constant 0 : i32
    return %c0_i32, %c0_i32_0, %c0_i32_1 : i32, i32, i32
  }
  func.func @transform_3(%arg0: i32) -> (i32, i32, i32) {
    %c0_i32 = arith.constant 0 : i32
    %c0_i32_0 = arith.constant 0 : i32
    %c0_i32_1 = arith.constant 0 : i32
    %c0_i32_2 = arith.constant 0 : i32
    return %c0_i32, %c0_i32_0, %c0_i32_1 : i32, i32, i32
  }
  func.func @transform_4(%arg0: i32) -> (i32, i32, i32) {
    %c0_i32 = arith.constant 0 : i32
    %c0_i32_0 = arith.constant 0 : i32
    %c0_i32_1 = arith.constant 0 : i32
    return %arg0, %c0_i32, %c0_i32_0 : i32, i32, i32
  }
  func.func @transform_5(%arg0: i32) -> (i32, i32, i32) {
    %c0_i32 = arith.constant 0 : i32
    %c0_i32_0 = arith.constant 0 : i32
    %c0_i32_1 = arith.constant 0 : i32
    return %arg0, %c0_i32, %c0_i32_0 : i32, i32, i32
  }
}

</mosaic_0001>

<bundles_post_ra>
// kernel: tile.23
= control target key start
LH: loop header
LB: loop body
LE: loop exit
PB: predicated region body
PF: predicated region fallthrough
CT: control target
= control target key end

     0   :  { %s22_s0 = inlined_call_operand.vmem [shape: f32[32], index: 0, kind: input, shape index: {}]   ;;  %s23_s1 = inlined_call_operand.vmem [shape: f32[8,32], index: 1, kind: output, shape index: {}]  }
   0x1   :  { %v4_v0 = vld [vmem:[%s22_s0] ss:$0 sm:$0xff] }
   0x2   :  { %5 = vst [vmem:[%s23_s1] sm:$0xff] %v4_v0 }

// kernel: tile.24
= control target key start
LH: loop header
LB: loop body
LE: loop exit
PB: predicated region body
PF: predicated region fallthrough
CT: control target
= control target key end

     0   :  { %s7_s6 = smov 3  ;;  %s14_s9 = smov 3  ;;  %vm4_vm0 = vcmask 261120   ;;  %vm11_vm1 = vcmask 1048320   ;;  %vm18_vm2 = vcmask 785920   ;;  %vm25_vm3 = vcmask 523520   ;;  %s76_s0 = inlined_call_operand.vmem [shape: f32[8,32], index: 0, kind: input, shape index: {}]   ;;  %s77_s1 = inlined_call_operand.vmem [shape: f32[1,1,256], index: 1, kind: output, shape index: {}]  }
   0x1   :  { %v38_v0 = vld [vmem:[%s76_s0 + $0x3] ss:$4 sm:%s7_s6]   ;;  %s45_s10 = smov 96   ;;  %s21_s11 = smov 3  ;;  %v39_v1 = vld [vmem:[%s76_s0 + $0x2] ss:$4 sm:%s14_s9]  }
   0x2   :  { %9 = vrot.lane.b32.xlu0 %v38_v0, %s45_s10  ;;  %v40_v2 = vld [vmem:[%s76_s0 + $0x1] ss:$4 sm:%s21_s11]   ;;  %s2_s16 = smov 3  ;;  %s46_s17 = smov 32  }
   0x3   :  { %23 = vrot.lane.b32.xlu1 %v40_v2, %s46_s17  ;;  %v3_v3 = vld [vmem:[%s76_s0] ss:$4 sm:%s2_s16]   ;;  %s47_s0 = smov 64  }
   0x4   :  { %5 = vst.msk [vmem:[#allocation0] ss:$8 sm:$0x3] %vm4_vm0, %v3_v3  }
   0x6   :  { %16 = vrot.lane.b32.xlu0 %v39_v1, %s47_s0 }
  0x74   :  { %v10_v4 = vpop.permute.xlu0 %9  }
  0x75   :  { %12 = vst.msk [vmem:[#allocation0] ss:$8 sm:$0x3] %vm11_vm1, %v10_v4   ;;  %v24_v5 = vpop.permute.xlu1 %23  }
  0x78   :  { %v17_v6 = vpop.permute.xlu0 %16  }
  0x79   :  { %19 = vst.msk [vmem:[#allocation0] ss:$8 sm:$0x3] %vm18_vm2, %v17_v6  }
  0x7a   :  { %26 = vst.msk [vmem:[#allocation0] ss:$8 sm:$0x3] %vm25_vm3, %v24_v5  }
  0x81   :  { %v30_v7 = vld [vmem:[#allocation0] sm:$0x1]  ;;  %v34_v8 = vld [vmem:[#allocation0 + $0x8] sm:$0x1] }
  0x82   :  { %32 = vst [vmem:[%s77_s1] sm:$0x1] %v30_v7  ;;  %41 = vst [vmem:[%s77_s1 + $0x1] sm:$0x1] %v34_v8 }

// kernel: basic_block_forward.2
= control target key start
LH: loop header
LB: loop body
LE: loop exit
PB: predicated region body
PF: predicated region fallthrough
CT: control target
= control target key end

     0   :  { %s2165_s21 = smov 0   ;;  %s2962_s0 = inlined_call_operand.vmem [shape: f32[16,8,256], index: 0, kind: input, shape index: {}]   ;;  %s2963_s1 = inlined_call_operand.vmem [shape: f32[1,1,256], index: 1, kind: input, shape index: {}]   ;;  %s2964_s2 = inlined_call_operand.vmem [shape: f32[1,1,256], index: 2, kind: input, shape index: {}]   ;;  %s2965_s3 = inlined_call_operand.vmem [shape: bf16[3,256,256], index: 3, kind: input, shape index: {}]   ;;  %s2966_s4 = inlined_call_operand.vmem [shape: bf16[16,8,256], index: 4, kind: output, shape index: {0}]   ;;  %s2967_s5 = inlined_call_operand.vmem [shape: f32[2,1,256], index: 5, kind: output, shape index: {1}]   ;;  %s2968_s6 = inlined_call_operand.vmem [shape: f32[2,1,256], index: 6, kind: output, shape index: {2}]  }
   0x1 LB: > { %s2171_s22 = sadd.s32 4294967295, %s2127_s21   ;;  %p1747_p0 = scmp.ge.s32.totalorder %s2127_s21, 1  ;;  %s2127_s21 = sphi %s2165_s21, %s17_s21  }
   0x2   : > { %p219_p1 = scmp.lt.s32.totalorder %s2127_s21, 3 }
   0x4   : > { %p220_p2 = pnand %p1747_p0, %p219_p1 }
   0x5   : > { %v1977_v0 = vld [vmem:[%s2965_s3 + $0x4] ss:$8 sps:$4 sm:$0xff] (!%p220_p2)   ;;  %v1981_v2 = vld [vmem:[%s2965_s3] ss:$8 sps:$4 sm:$0xff] (!%p220_p2)   ;;  %v1983_v4 = vld [vmem:[%s2965_s3 + $0x14] ss:$8 sps:$4 sm:$0xff] (!%p220_p2)   ;;  %v299_v36 = vlaneseq (!%p220_p2) }
   0x6   : > { %223 = sbr.rel (%p220_p2) target bundleno = 403 (0x193), region = 36  ;;  %v1979_v1 = vld [vmem:[%s2965_s3 + $0x104] ss:$8 sps:$4 sm:$0xff] (!%p220_p2)   ;;  %707 = vmatprep.subr.bf16.mxu0 (!%p220_p2), %v1977_v0  ;;  %v1982_v3 = vld [vmem:[%s2965_s3 + $0x100] ss:$8 sps:$4 sm:$0xff] (!%p220_p2)   ;;  %s1748_s15 = sshll.u32 (!%p220_p2), %s2171_s22, 3 }
   0x7   : > { %1013 = vmatprep.subr.bf16.mxu1 (!%p220_p2), %v1979_v1  ;;  %708 = vmatpush1.bf16.msra.mxu0 (!%p220_p2), %v1981_v2  ;;  %v1985_v5 = vld [vmem:[%s2965_s3 + $0x114] ss:$8 sps:$4 sm:$0xff] (!%p220_p2)   ;;  %v1987_v6 = vld [vmem:[%s2965_s3 + $0x10] ss:$8 sps:$4 sm:$0xff] (!%p220_p2)   ;;  %v1989_v8 = vld [vmem:[%s2965_s3 + $0x24] ss:$8 sps:$4 sm:$0xff] (!%p220_p2)  }
   0x8   : > { %1014 = vmatpush1.bf16.msra.mxu1 (!%p220_p2), %v1982_v3  ;;  %709 = vmatprep.subr.bf16.mxu0 (!%p220_p2), %v1983_v4  ;;  %v1988_v7 = vld [vmem:[%s2965_s3 + $0x110] ss:$8 sps:$4 sm:$0xff] (!%p220_p2)   ;;  %v1991_v9 = vld [vmem:[%s2965_s3 + $0x124] ss:$8 sps:$4 sm:$0xff] (!%p220_p2)   ;;  %v1993_v10 = vld [vmem:[%s2965_s3 + $0x20] ss:$8 sps:$4 sm:$0xff] (!%p220_p2)  }
   0x9   : > { %1015 = vmatprep.subr.bf16.mxu1 (!%p220_p2), %v1985_v5  ;;  %v1994_v11 = vld [vmem:[%s2965_s3 + $0x120] ss:$8 sps:$4 sm:$0xff] (!%p220_p2)   ;;  %v1995_v12 = vld [vmem:[%s2965_s3 + $0x34] ss:$8 sps:$4 sm:$0xff] (!%p220_p2)   ;;  %v1999_v14 = vld [vmem:[%s2965_s3 + $0x30] ss:$8 sps:$4 sm:$0xff] (!%p220_p2)  }
   0xa   : > { %v1997_v13 = vld [vmem:[%s2965_s3 + $0x134] ss:$8 sps:$4 sm:$0xff] (!%p220_p2)   ;;  %v2000_v15 = vld [vmem:[%s2965_s3 + $0x130] ss:$8 sps:$4 sm:$0xff] (!%p220_p2)   ;;  %v2001_v16 = vld [vmem:[%s2965_s3 + $0x44] ss:$8 sps:$4 sm:$0xff] (!%p220_p2)  }
   0xb   : > { %710 = vmatpush1.bf16.msra.mxu0 (!%p220_p2), %v1987_v6  ;;  %v2003_v17 = vld [vmem:[%s2965_s3 + $0x144] ss:$8 sps:$4 sm:$0xff] (!%p220_p2)   ;;  %v2005_v18 = vld [vmem:[%s2965_s3 + $0x40] ss:$8 sps:$4 sm:$0xff] (!%p220_p2)   ;;  %v2007_v20 = vld [vmem:[%s2965_s3 + $0x54] ss:$8 sps:$4 sm:$0xff] (!%p220_p2)  }
   0xc   : > { %1016 = vmatpush1.bf16.msra.mxu1 (!%p220_p2), %v1988_v7  ;;  %711 = vmatprep.subr.bf16.mxu0 (!%p220_p2), %v1989_v8  ;;  %v2006_v19 = vld [vmem:[%s2965_s3 + $0x140] ss:$8 sps:$4 sm:$0xff] (!%p220_p2)   ;;  %v2009_v21 = vld [vmem:[%s2965_s3 + $0x154] ss:$8 sps:$4 sm:$0xff] (!%p220_p2)   ;;  %v2011_v22 = vld [vmem:[%s2965_s3 + $0x50] ss:$8 sps:$4 sm:$0xff] (!%p220_p2)  }
   0xd   : > { %1017 = vmatprep.subr.bf16.mxu1 %v1991_v9  ;;  %v2012_v23 = vld [vmem:[%s2965_s3 + $0x150] ss:$8 sps:$4 sm:$0xff]   ;;  %v2013_v24 = vld [vmem:[%s2965_s3 + $0x64] ss:$8 sps:$4 sm:$0xff]   ;;  %v2017_v26 = vld [vmem:[%s2965_s3 + $0x60] ss:$8 sps:$4 sm:$0xff]  }
   0xe   : > { %v2015_v25 = vld [vmem:[%s2965_s3 + $0x164] ss:$8 sps:$4 sm:$0xff]   ;;  %v2018_v27 = vld [vmem:[%s2965_s3 + $0x160] ss:$8 sps:$4 sm:$0xff]   ;;  %v2019_v28 = vld [vmem:[%s2965_s3 + $0x74] ss:$8 sps:$4 sm:$0xff]  }
   0xf   : > { %712 = vmatpush1.bf16.msra.mxu0 %v1993_v10  ;;  %v2021_v29 = vld [vmem:[%s2965_s3 + $0x174] ss:$8 sps:$4 sm:$0xff]   ;;  %v2023_v30 = vld [vmem:[%s2965_s3 + $0x70] ss:$8 sps:$4 sm:$0xff]   ;;  %v2025_v32 = vld [vmem:[%s2965_s3 + $0x84] ss:$8 sps:$4 sm:$0xff]  }
  0x10   : > { %1018 = vmatpush1.bf16.msra.mxu1 %v1994_v11  ;;  %713 = vmatprep.subr.bf16.mxu0 %v1995_v12  ;;  %v2024_v31 = vld [vmem:[%s2965_s3 + $0x170] ss:$8 sps:$4 sm:$0xff]   ;;  %p260_p3 = scmp.lt.s32.totalorder %s1748_s15, 15  ;;  %v2027_v33 = vld [vmem:[%s2965_s3 + $0x184] ss:$8 sps:$4 sm:$0xff]   ;;  %v2296_v40 = vshrl.u32 %v299_v36, 7 }
  0x11   : > { %1019 = vmatprep.subr.bf16.mxu1 %v1997_v13  ;;  %v2029_v34 = vld [vmem:[%s2965_s3 + $0x80] ss:$8 sps:$4 sm:$0xff]   ;;  %v2031_v37 = vld [vmem:[%s2965_s3 + $0x94] ss:$8 sps:$4 sm:$0xff]   ;;  %v2035_v39 = vld [vmem:[%s2965_s3 + $0x90] ss:$8 sps:$4 sm:$0xff]  }
  0x12   : > { %v2030_v35 = vld [vmem:[%s2965_s3 + $0x180] ss:$8 sps:$4 sm:$0xff]   ;;  %s3000_s15 = smov (!%p260_p3, %s1748_s15), 15  ;;  %v2033_v38 = vld [vmem:[%s2965_s3 + $0x194] ss:$8 sps:$4 sm:$0xff]   ;;  %v305_v47 = vsub.s32 1, %v2296_v40 }
  0x13   : > { %714 = vmatpush1.bf16.msra.mxu0 %v1999_v14  ;;  %v2036_v41 = vld [vmem:[%s2965_s3 + $0x190] ss:$8 sps:$4 sm:$0xff]   ;;  %v2037_v42 = vld [vmem:[%s2965_s3 + $0xa4] ss:$8 sps:$4 sm:$0xff]   ;;  %s1926_s17 = sshll.u32 %s3000_s15, 4  ;;  %v301_v53 = vsub.s32 0, %v2296_v40 }
  0x14   : > { %1020 = vmatpush1.bf16.msra.mxu1 %v2000_v15  ;;  %715 = vmatprep.subr.bf16.mxu0 %v2001_v16  ;;  %v2039_v43 = vld [vmem:[%s2965_s3 + $0x1a4] ss:$8 sps:$4 sm:$0xff]   ;;  %v2041_v44 = vld [vmem:[%s2965_s3 + $0xa0] ss:$8 sps:$4 sm:$0xff]   ;;  %s2317_s28 = scalar_lea.vmem %s2962_s0, %s1926_s17  ;;  %v2043_v46 = vld [vmem:[%s2965_s3 + $0xb4] ss:$8 sps:$4 sm:$0xff]  }
  0x15   : > { %1021 = vmatprep.subr.bf16.mxu1 %v2003_v17  ;;  %v2042_v45 = vld [vmem:[%s2965_s3 + $0x1a0] ss:$8 sps:$4 sm:$0xff]   ;;  %v2045_v48 = vld [vmem:[%s2965_s3 + $0x1b4] ss:$8 sps:$4 sm:$0xff]   ;;  %v2047_v54 = vld [vmem:[%s2965_s3 + $0xb0] ss:$8 sps:$4 sm:$0xff]  }
  0x16   : > { %v282_v49 = vld [vmem:[%s2317_s28 + $0x8] sm:$0xff]  ;;  %v284_v50 = vld [vmem:[%s2317_s28 + $0x18] sm:$0xff]  ;;  %v297_v51 = vld [vmem:[%s2963_s1] sm:$0x3]  ;;  %vm796_vm0 = vcmp.lt.s32.totalorder %v2296_v40, 1  ;;  %vm1368_vm10 = vcmp.lt.s32.totalorder %v2296_v40, 7 }
  0x17   : > { %716 = vmatpush1.bf16.msra.mxu0 %v2005_v18  ;;  %v325_v52 = vld [vmem:[%s2964_s2] sm:$0x3]  ;;  %v2048_v55 = vld [vmem:[%s2965_s3 + $0x1b0] ss:$8 sps:$4 sm:$0xff]   ;;  %v2341_v56 = vrot.slane %v297_v51, %v305_v47  ;;  %v2049_v58 = vld [vmem:[%s2965_s3 + $0xc4] ss:$8 sps:$4 sm:$0xff]   ;;  %v2359_v0 = vrot.slane %v297_v51, %v301_v53 }
  0x18   : > { %1022 = vmatpush1.bf16.msra.mxu1 %v2006_v19  ;;  %717 = vmatprep.subr.bf16.mxu0 %v2007_v20  ;;  %v2343_v57 = vrot.slane %v325_v52, %v305_v47  ;;  %v2051_v59 = vld [vmem:[%s2965_s3 + $0x1c4] ss:$8 sps:$4 sm:$0xff]   ;;  %v2053_v62 = vld [vmem:[%s2965_s3 + $0xc0] ss:$8 sps:$4 sm:$0xff]   ;;  %v283_v4 = vld [vmem:[%s2317_s28 + $0x10] sm:$0xff]  ;;  %v2376_v12 = vrot.slane %v325_v52, %v301_v53  ;;  %s1927_s10 = sshll.u32 %s3000_s15, 3 }
  0x19   : > { %1023 = vmatprep.subr.bf16.mxu1 %v2009_v21  ;;  %v310_v60 = vmul.f32 %v2341_v56, %v282_v49  ;;  %v312_v61 = vmul.f32 %v2341_v56, %v284_v50  ;;  %v2054_v63 = vld [vmem:[%s2965_s3 + $0x1c0] ss:$8 sps:$4 sm:$0xff]   ;;  %v2055_v5 = vld [vmem:[%s2965_s3 + $0xd4] ss:$8 sps:$4 sm:$0xff]   ;;  %v2059_v9 = vld [vmem:[%s2965_s3 + $0xd0] ss:$8 sps:$4 sm:$0xff]   ;;  %v311_v11 = vmul.f32 %v2359_v0, %v283_v4  ;;  %s2841_s12 = scalar_lea.vmem %s2966_s4, %s1927_s10 }
  0x1a   : > { %v281_v3 = vld [vmem:[%s2317_s28] sm:$0xff]  ;;  %v2057_v6 = vld [vmem:[%s2965_s3 + $0x1d4] ss:$8 sps:$4 sm:$0xff]   ;;  %v286_v13 = vld [vmem:[%s2317_s28 + $0x28] sm:$0xff]  ;;  %p273_p4 = scmp.lt.s32.totalorder %s2171_s22, 1 }
  0x1b   : > { %718 = vmatpush1.bf16.msra.mxu0 %v2011_v22  ;;  %v338_v1 = vadd.f32 %v2343_v57, %v310_v60  ;;  %v340_v2 = vadd.f32 %v2343_v57, %v312_v61  ;;  %v309_v10 = vmul.f32 %v2359_v0, %v281_v3  ;;  %v288_v14 = vld [vmem:[%s2317_s28 + $0x38] sm:$0xff]  ;;  %v2061_v16 = vld [vmem:[%s2965_s3 + $0xe4] ss:$8 sps:$4 sm:$0xff]   ;;  %v314_v19 = vmul.f32 %v2341_v56, %v286_v13  ;;  %v2065_v21 = vld [vmem:[%s2965_s3 + $0xe0] ss:$8 sps:$4 sm:$0xff]  }
  0x1c   : > { %1024 = vmatpush1.bf16.msra.mxu1 %v2012_v23  ;;  %719 = vmatprep.subr.bf16.mxu0 %v2013_v24  ;;  %v2060_v15 = vld [vmem:[%s2965_s3 + $0x1d0] ss:$8 sps:$4 sm:$0xff]   ;;  %v2063_v18 = vld [vmem:[%s2965_s3 + $0x1e4] ss:$8 sps:$4 sm:$0xff]   ;;  %v316_v20 = vmul.f32 %v2341_v56, %v288_v14  ;;  %v2066_v22 = vld [vmem:[%s2965_s3 + $0x1e0] ss:$8 sps:$4 sm:$0xff]   ;;  %v339_v24 = vadd.f32 %v2376_v12, %v311_v11 }
  0x1d   : > { %1025 = vmatprep.subr.bf16.mxu1 %v2015_v25  ;;  %v354_v7 = vmax.f32 %v338_v1, 0.0  ;;  %v356_v8 = vmax.f32 %v340_v2, 0.0  ;;  %v337_v23 = vadd.f32 %v2376_v12, %v309_v10  ;;  %v285_v25 = vld [vmem:[%s2317_s28 + $0x20] sm:$0xff]  ;;  %v291_v51 = vld [vmem:[%s2317_s28 + $0x50] sm:$0xff]  ;;  %s3002_s22 = smov (!%p273_p4, %s2171_s22), 1 }
  0x1e   : > { %v2073_v47 = vld [vmem:[%s2965_s3 + $0x200] ss:$8 sps:$4 sm:$0xff]   ;;  %v2078_v52 = vld [vmem:[%s2965_s3 + $0x214] ss:$8 sps:$4 sm:$0xff]   ;;  %v2076_v1 = vld [vmem:[%s2965_s3 + $0x210] ss:$8 sps:$4 sm:$0xff]  }
  0x1f   : > { %720 = vmatpush1.bf16.msra.mxu0 %v2017_v26  ;;  %v2386_v17 = vpack.c.bf16 %v356_v8, %v354_v7  ;;  %v287_v26 = vld [vmem:[%s2317_s28 + $0x30] sm:$0xff]  ;;  %v289_v50 = vld [vmem:[%s2317_s28 + $0x40] sm:$0xff]  ;;  %s1754_s13 = sshll.u32 %s3002_s22, 1 }
  0x20   : > { %1026 = vmatpush1.bf16.msra.mxu1 %v2018_v27  ;;  %721 = vmatprep.subr.bf16.mxu0 %v2019_v28  ;;  %v2067_v27 = vld [vmem:[%s2965_s3 + $0xf4] ss:$8 sps:$4 sm:$0xff]   ;;  %v317_v61 = vmul.f32 %v2359_v0, %v289_v50  ;;  %v2081_v2 = vld [vmem:[%s2965_s3 + $0x224] ss:$8 sps:$4 sm:$0xff]   ;;  %v2079_v10 = vld [vmem:[%s2965_s3 + $0x220] ss:$8 sps:$4 sm:$0xff]   ;;  %s276_s17 = scalar_lea.vmem %s2967_s5, %s1754_s13  ;;  %s280_s20 = scalar_lea.vmem %s2968_s6, %s1754_s13 }
  0x21   : > { %1027 = vmatprep.subr.bf16.mxu1 %v2021_v29  ;;  %739 = vmatprep.mubr.bf16.mxu0 %v2386_v17  ;;  %v2069_v28 = vld [vmem:[%s2965_s3 + $0x1f4] ss:$8 sps:$4 sm:$0xff]   ;;  %v342_v29 = vadd.f32 %v2343_v57, %v314_v19  ;;  %v293_v11 = vld [vmem:[%s2317_s28 + $0x60] sm:$0xff]  ;;  %v2112_v50 = vld [vmem:[%s2965_s3 + $0x2d0] ss:$8 sps:$4 sm:$0xff]  }
  0x22   : > { %1045 = vmatprep.mubr.bf16.mxu1 %v2386_v17  ;;  %v345_v8 = vadd.f32 %v2376_v12, %v317_v61  ;;  %v295_v13 = vld [vmem:[%s2317_s28 + $0x70] sm:$0xff] }
  0x23   : > { %722 = vmatpush1.bf16.msra.mxu0 %v2023_v30  ;;  %v344_v30 = vadd.f32 %v2343_v57, %v316_v20  ;;  %v321_v20 = vmul.f32 %v2359_v0, %v293_v11 }
  0x24   : > { %1028 = vmatpush1.bf16.msra.mxu1 %v2024_v31  ;;  %723 = vmatprep.subr.bf16.mxu0 %v2025_v32  ;;  %v290_v31 = vld [vmem:[%s2317_s28 + $0x48] sm:$0xff]  ;;  %v353_v32 = vmax.f32 %v337_v23, 0.0 }
  0x25   : > { %1029 = vmatprep.subr.bf16.mxu1 %v2027_v33  ;;  %v355_v33 = vmax.f32 %v339_v24, 0.0 }
  0x27   : > { %724 = vmatpush1.bf16.msra.mxu0 %v2029_v34  ;;  %v313_v34 = vmul.f32 %v2359_v0, %v285_v25 }
  0x28   : > { %1030 = vmatpush1.bf16.msra.mxu1 %v2030_v35  ;;  %725 = vmatprep.subr.bf16.mxu0 %v2031_v37  ;;  %v315_v35 = vmul.f32 %v2359_v0, %v287_v26  ;;  %v292_v37 = vld [vmem:[%s2317_s28 + $0x58] sm:$0xff] }
  0x29   : > { %1031 = vmatprep.subr.bf16.mxu1 %v2033_v38  ;;  %v2071_v38 = vld [vmem:[%s2965_s3 + $0xf0] ss:$8 sps:$4 sm:$0xff]  }
  0x2a   : > { %v343_v49 = vadd.f32 %v2376_v12, %v315_v35  ;;  %v2096_v35 = vld [vmem:[%s2965_s3 + $0x274] ss:$8 sps:$4 sm:$0xff]  }
  0x2b   : > { %726 = vmatpush1.bf16.msra.mxu0 %v2035_v39  ;;  %v2072_v39 = vld [vmem:[%s2965_s3 + $0x1f0] ss:$8 sps:$4 sm:$0xff]  }
  0x2c   : > { %1032 = vmatpush1.bf16.msra.mxu1 %v2036_v41  ;;  %727 = vmatprep.subr.bf16.mxu0 %v2037_v42  ;;  %v2075_v41 = vld [vmem:[%s2965_s3 + $0x204] ss:$8 sps:$4 sm:$0xff]   ;;  %v358_v42 = vmax.f32 %v342_v29, 0.0  ;;  %v359_v60 = vmax.f32 %v343_v49, 0.0  ;;  %v2114_v49 = vld [vmem:[%s2965_s3 + $0x2d4] ss:$8 sps:$4 sm:$0xff]  }
  0x2d   : > { %1033 = vmatprep.subr.bf16.mxu1 %v2039_v43  ;;  %v360_v43 = vmax.f32 %v344_v30, 0.0 }
  0x2f   : > { %728 = vmatpush1.bf16.msra.mxu0 %v2041_v44  ;;  %v318_v44 = vmul.f32 %v2341_v56, %v290_v31  ;;  %v2440_v53 = vpack.c.bf16 %v360_v43, %v358_v42  ;;  %v2100_v42 = vld [vmem:[%s2965_s3 + $0x290] ss:$8 sps:$4 sm:$0xff]   ;;  %v2103_v43 = vld [vmem:[%s2965_s3 + $0x2a0] ss:$8 sps:$4 sm:$0xff]  }
  0x30   : > { %1034 = vmatpush1.bf16.msra.mxu1 %v2042_v45  ;;  %729 = vmatprep.subr.bf16.mxu0 %v2043_v46  ;;  %v320_v45 = vmul.f32 %v2341_v56, %v292_v37  ;;  %v2428_v46 = vpack.c.bf16 %v355_v33, %v353_v32  ;;  %v2093_v32 = vld [vmem:[%s2965_s3 + $0x264] ss:$8 sps:$4 sm:$0xff]   ;;  %v2094_v37 = vld [vmem:[%s2965_s3 + $0x270] ss:$8 sps:$4 sm:$0xff]  }
  0x31   : > { %1035 = vmatprep.subr.bf16.mxu1 %v2045_v48  ;;  %v341_v48 = vadd.f32 %v2376_v12, %v313_v34  ;;  %v2091_v34 = vld [vmem:[%s2965_s3 + $0x260] ss:$8 sps:$4 sm:$0xff]  }
  0x33   : > { %730 = vmatpush1.bf16.msra.mxu0 %v2047_v54  ;;  %v346_v54 = vadd.f32 %v2343_v57, %v318_v44  ;;  %v2108_v44 = vld [vmem:[%s2965_s3 + $0x2b4] ss:$8 sps:$4 sm:$0xff]  }
  0x34   : > { %1036 = vmatpush1.bf16.msra.mxu1 %v2048_v55  ;;  %731 = vmatprep.subr.bf16.mxu0 %v2049_v58  ;;  %v348_v55 = vadd.f32 %v2343_v57, %v320_v45  ;;  %v294_v58 = vld [vmem:[%s2317_s28 + $0x68] sm:$0xff]  ;;  %v2106_v45 = vld [vmem:[%s2965_s3 + $0x2b0] ss:$8 sps:$4 sm:$0xff]  }
  0x35   : > { %1037 = vmatprep.subr.bf16.mxu1 %v2051_v59  ;;  %v357_v59 = vmax.f32 %v341_v48, 0.0  ;;  %v362_v3 = vmax.f32 %v346_v54, 0.0  ;;  %v2109_v48 = vld [vmem:[%s2965_s3 + $0x2c0] ss:$8 sps:$4 sm:$0xff]   ;;  %v2120_v54 = vld [vmem:[%s2965_s3 + $0x2f4] ss:$8 sps:$4 sm:$0xff]  }
  0x36   : > { %v364_v4 = vmax.f32 %v348_v55, 0.0  ;;  %v2118_v55 = vld [vmem:[%s2965_s3 + $0x2f0] ss:$8 sps:$4 sm:$0xff]  }
  0x37   : > { %732 = vmatpush1.bf16.msra.mxu0 %v2053_v62  ;;  %v319_v62 = vmul.f32 %v2359_v0, %v291_v51  ;;  %v2460_v7 = vpack.c.bf16 %v359_v60, %v357_v59  ;;  %v2117_v51 = vld [vmem:[%s2965_s3 + $0x2e4] ss:$8 sps:$4 sm:$0xff]  }
  0x38   : > { %1038 = vmatpush1.bf16.msra.mxu1 %v2054_v63  ;;  %733 = vmatprep.subr.bf16.mxu0 %v2055_v5  ;;  %v296_v63 = vld [vmem:[%s2317_s28 + $0x78] sm:$0xff]  ;;  %v322_v5 = vmul.f32 %v2341_v56, %v294_v58  ;;  %v374_v14 = vpack.c.bf16 %v364_v4, %v362_v3  ;;  %v2575_v58 = vadd.s32 8, %v2296_v40 }
  0x39   : > { %1039 = vmatprep.subr.bf16.mxu1 %v2057_v6  ;;  %v324_v6 = vmul.f32 %v2341_v56, %v296_v63  ;;  %v2084_v56 = vld [vmem:[%s2965_s3 + $0x234] ss:$8 sps:$4 sm:$0xff]   ;;  %v2588_v63 = vadd.s32 16, %v2296_v40 }
  0x3a   : > { %v397_v59 = vand.u32 7, %v2575_v58 }
  0x3b   : > { %734 = vmatpush1.bf16.msra.mxu0 %v2059_v9  ;;  %v347_v9 = vadd.f32 %v2376_v12, %v319_v62 }
  0x3c   : > { %1040 = vmatpush1.bf16.msra.mxu1 %v2060_v15  ;;  %735 = vmatprep.subr.bf16.mxu0 %v2061_v16  ;;  %v350_v15 = vadd.f32 %v2343_v57, %v322_v5  ;;  %v352_v16 = vadd.f32 %v2343_v57, %v324_v6  ;;  %v2087_v57 = vld [vmem:[%s2965_s3 + $0x244] ss:$8 sps:$4 sm:$0xff]   ;;  %vm814_vm1 = vcmp.eq.s32.totalorder %v397_v59, 0  ;;  %v2594_v6 = vadd.s32 24, %v2296_v40 }
  0x3d   : > { %1041 = vmatprep.subr.bf16.mxu1 %v2063_v18  ;;  %v361_v18 = vmax.f32 %v345_v8, 0.0  ;;  %v363_v19 = vmax.f32 %v347_v9, 0.0  ;;  %vm2779_vm12 = vcmp.eq.s32.totalorder %v397_v59, 7 }
  0x3e   : > { %v366_v23 = vmax.f32 %v350_v15, 0.0  ;;  %v368_v24 = vmax.f32 %v352_v16, 0.0  ;;  %v411_v15 = vand.u32 7, %v2594_v6 }
  0x3f   : > { %736 = vmatpush1.bf16.msra.mxu0 %v2065_v21  ;;  %v323_v21 = vmul.f32 %v2359_v0, %v295_v13  ;;  %v2484_v25 = vpack.c.bf16 %v363_v19, %v361_v18  ;;  %v349_v0 = vadd.f32 %v2376_v12, %v321_v20 }
  0x40   : > { %1042 = vmatpush1.bf16.msra.mxu1 %v2066_v22  ;;  %737 = vmatprep.subr.bf16.mxu0 %v2067_v27  ;;  %v2082_v22 = vld [vmem:[%s2965_s3 + $0x230] ss:$8 sps:$4 sm:$0xff]   ;;  %v2085_v27 = vld [vmem:[%s2965_s3 + $0x240] ss:$8 sps:$4 sm:$0xff]   ;;  %v2494_v29 = vpack.c.bf16 %v368_v24, %v366_v23  ;;  %v2618_v23 = vadd.s32 32, %v2296_v40  ;;  %vm2624_vm3 = vcmp.eq.s32.totalorder %v411_v15, 0 }
  0x41   : > { %1043 = vmatprep.subr.bf16.mxu1 %v2069_v28  ;;  %v351_v26 = vadd.f32 %v2376_v12, %v323_v21  ;;  %v2090_v28 = vld [vmem:[%s2965_s3 + $0x254] ss:$8 sps:$4 sm:$0xff]   ;;  %v365_v30 = vmax.f32 %v349_v0, 0.0  ;;  %v2088_v12 = vld [vmem:[%s2965_s3 + $0x250] ss:$8 sps:$4 sm:$0xff]   ;;  %vm2819_vm14 = vcmp.eq.s32.totalorder %v411_v15, 7 }
  0x43   : > { %738 = vmatpush1.bf16.msra.mxu0 %v2071_v38  ;;  %v367_v31 = vmax.f32 %v351_v26, 0.0  ;;  %v2099_v38 = vld [vmem:[%s2965_s3 + $0x284] ss:$8 sps:$4 sm:$0xff]  }
  0x44   : > { %1044 = vmatpush1.bf16.msra.mxu1 %v2072_v39  ;;  %1279 = vmatprep.subr.bf16.mxu0 %v2075_v41  ;;  %v2097_v39 = vld [vmem:[%s2965_s3 + $0x280] ss:$8 sps:$4 sm:$0xff]  }
  0x45   : > { %1936 = vmatprep.subr.bf16.mxu1 %v2075_v41  ;;  %v2506_v33 = vpack.c.bf16 %v367_v31, %v365_v30  ;;  %v2102_v41 = vld [vmem:[%s2965_s3 + $0x294] ss:$8 sps:$4 sm:$0xff]   ;;  %v2629_v31 = vadd.s32 40, %v2296_v40 }
  0x46   : > { %740 = vmatmul.mubr.bf16.vlgmr.msra.gmra.mrb[0].mxu0 %v2428_v46 }
  0x47   : > { %1046 = vmatmul.mubr.bf16.vlgmr.msra.gmra.mrb[0].mxu1 %v2428_v46  ;;  %1280 = vmatpush1.bf16.msra.mxu0 %v2073_v47 }
  0x48   : > { %1952 = vmatpush1.bf16.msra.mxu1 %v2073_v47  ;;  %1281 = vmatprep.subr.bf16.mxu0 %v2078_v52  ;;  %v2111_v47 = vld [vmem:[%s2965_s3 + $0x2c4] ss:$8 sps:$4 sm:$0xff]  }
  0x49   : > { %1937 = vmatprep.subr.bf16.mxu1 %v2078_v52  ;;  %749 = vmatprep.mubr.bf16.mxu0 %v2440_v53  ;;  %v2115_v52 = vld [vmem:[%s2965_s3 + $0x2e0] ss:$8 sps:$4 sm:$0xff]  }
  0x4a   : > { %1055 = vmatprep.mubr.bf16.mxu1 %v2440_v53 }
  0x4b   : > { %1282 = vmatpush1.bf16.msra.mxu0 %v2076_v1 }
  0x4c   : > { %1953 = vmatpush1.bf16.msra.mxu1 %v2076_v1  ;;  %1283 = vmatprep.subr.bf16.mxu0 %v2081_v2 }
  0x4d   : > { %1938 = vmatprep.subr.bf16.mxu1 %v2081_v2 }
  0x4e   : > { %750 = vmatmul.mubr.bf16.gmra.mrb[4].mxu0 %v2460_v7 }
  0x4f   : > { %1056 = vmatmul.mubr.bf16.gmra.mrb[4].mxu1 %v2460_v7  ;;  %1284 = vmatpush1.bf16.msra.mxu0 %v2079_v10 }
  0x50   : > { %1954 = vmatpush1.bf16.msra.mxu1 %v2079_v10  ;;  %1285 = vmatprep.subr.bf16.mxu0 %v2084_v56  ;;  %v404_v10 = vand.u32 7, %v2588_v63 }
  0x51   : > { %1939 = vmatprep.subr.bf16.mxu1 %v2084_v56  ;;  %759 = vmatprep.mubr.bf16.mxu0 %v374_v14 }
  0x52   : > { %1065 = vmatprep.mubr.bf16.mxu1 %v374_v14  ;;  %vm2613_vm2 = vcmp.eq.s32.totalorder %v404_v10, 0  ;;  %vm2813_vm13 = vcmp.eq.s32.totalorder %v404_v10, 7 }
  0x53   : > { %1286 = vmatpush1.bf16.msra.mxu0 %v2082_v22 }
  0x54   : > { %1955 = vmatpush1.bf16.msra.mxu1 %v2082_v22  ;;  %1287 = vmatprep.subr.bf16.mxu0 %v2087_v57 }
  0x55   : > { %1940 = vmatprep.subr.bf16.mxu1 %v2087_v57 }
  0x56   : > { %760 = vmatmul.mubr.bf16.gmra.mrb[8].mxu0 %v2484_v25 }
  0x57   : > { %1066 = vmatmul.mubr.bf16.gmra.mrb[8].mxu1 %v2484_v25  ;;  %1288 = vmatpush1.bf16.msra.mxu0 %v2085_v27 }
  0x58   : > { %1956 = vmatpush1.bf16.msra.mxu1 %v2085_v27  ;;  %1289 = vmatprep.subr.bf16.mxu0 %v2090_v28 }
  0x59   : > { %1941 = vmatprep.subr.bf16.mxu1 %v2090_v28  ;;  %769 = vmatprep.mubr.bf16.mxu0 %v2494_v29 }
  0x5a   : > { %1075 = vmatprep.mubr.bf16.mxu1 %v2494_v29 }
  0x5b   : > { %1290 = vmatpush1.bf16.msra.mxu0 %v2088_v12 }
  0x5c   : > { %1957 = vmatpush1.bf16.msra.mxu1 %v2088_v12  ;;  %1291 = vmatprep.subr.bf16.mxu0 %v2093_v32 }
  0x5d   : > { %1942 = vmatprep.subr.bf16.mxu1 %v2093_v32 }
  0x5e   : > { %770 = vmatmul.mubr.bf16.gmra.mrb[12].mxu0 %v2506_v33 }
  0x5f   : > { %1076 = vmatmul.mubr.bf16.gmra.mrb[12].mxu1 %v2506_v33  ;;  %1292 = vmatpush1.bf16.msra.mxu0 %v2091_v34 }
  0x60   : > { %1958 = vmatpush1.bf16.msra.mxu1 %v2091_v34  ;;  %1293 = vmatprep.subr.bf16.mxu0 %v2096_v35 }
  0x61   : > { %1943 = vmatprep.subr.bf16.mxu1 %v2096_v35  ;;  %1311 = vmatprep.mubr.bf16.mxu0 %v2386_v17  ;;  %v2105_v17 = vld [vmem:[%s2965_s3 + $0x2a4] ss:$8 sps:$4 sm:$0xff]  }
  0x62   : > { %1331 = vmatprep.mubr.bf16.mxu1 %v374_v14 }
  0x63   : > { %1294 = vmatpush1.bf16.msra.mxu0 %v2094_v37 }
  0x64   : > { %1959 = vmatpush1.bf16.msra.mxu1 %v2094_v37  ;;  %1295 = vmatprep.subr.bf16.mxu0 %v2099_v38 }
  0x65   : > { %1944 = vmatprep.subr.bf16.mxu1 %v2099_v38  ;;  %v418_v38 = vand.u32 7, %v2618_v23 }
  0x67   : > { %1296 = vmatpush1.bf16.msra.mxu0 %v2097_v39  ;;  %vm2657_vm4 = vcmp.eq.s32.totalorder %v418_v38, 0  ;;  %vm2765_vm9 = vcmp.eq.s32.totalorder %v418_v38, 7 }
  0x68   : > { %1960 = vmatpush1.bf16.msra.mxu1 %v2097_v39  ;;  %1297 = vmatprep.subr.bf16.mxu0 %v2102_v41 }
  0x69   : > { %1945 = vmatprep.subr.bf16.mxu1 %v2102_v41 }
  0x6b   : > { %1298 = vmatpush1.bf16.msra.mxu0 %v2100_v42 }
  0x6c   : > { %1961 = vmatpush1.bf16.msra.mxu1 %v2100_v42  ;;  %1299 = vmatprep.subr.bf16.mxu0 %v2105_v17 }
  0x6d   : > { %1946 = vmatprep.subr.bf16.mxu1 %v2105_v17 }
  0x6f   : > { %1300 = vmatpush1.bf16.msra.mxu0 %v2103_v43 }
  0x70   : > { %1962 = vmatpush1.bf16.msra.mxu1 %v2103_v43  ;;  %1301 = vmatprep.subr.bf16.mxu0 %v2108_v44 }
  0x71   : > { %1947 = vmatprep.subr.bf16.mxu1 %v2108_v44  ;;  %v425_v44 = vand.u32 7, %v2629_v31 }
  0x73   : > { %1302 = vmatpush1.bf16.msra.mxu0 %v2106_v45  ;;  %vm2668_vm5 = vcmp.eq.s32.totalorder %v425_v44, 0  ;;  %vm2828_vm15 = vcmp.eq.s32.totalorder %v425_v44, 7 }
  0x74   : > { %1963 = vmatpush1.bf16.msra.mxu1 %v2106_v45  ;;  %1303 = vmatprep.subr.bf16.mxu0 %v2111_v47 }
  0x75   : > { %1948 = vmatprep.subr.bf16.mxu1 %v2111_v47 }
  0x77   : > { %1304 = vmatpush1.bf16.msra.mxu0 %v2109_v48 }
  0x78   : > { %1964 = vmatpush1.bf16.msra.mxu1 %v2109_v48  ;;  %1305 = vmatprep.subr.bf16.mxu0 %v2114_v49 }
  0x79   : > { %1949 = vmatprep.subr.bf16.mxu1 %v2114_v49 }
  0x7b   : > { %1306 = vmatpush1.bf16.msra.mxu0 %v2112_v50 }
  0x7c   : > { %1965 = vmatpush1.bf16.msra.mxu1 %v2112_v50  ;;  %1307 = vmatprep.subr.bf16.mxu0 %v2117_v51 }
  0x7d   : > { %1950 = vmatprep.subr.bf16.mxu1 %v2117_v51 }
  0x7f   : > { %1308 = vmatpush1.bf16.msra.mxu0 %v2115_v52 }
  0x80   : > { %1966 = vmatpush1.bf16.msra.mxu1 %v2115_v52  ;;  %1309 = vmatprep.subr.bf16.mxu0 %v2120_v54 }
  0x81   : > { %1951 = vmatprep.subr.bf16.mxu1 %v2120_v54  ;;  %v2662_v54 = vadd.s32 48, %v2296_v40 }
  0x83   : > { %1310 = vmatpush1.bf16.msra.mxu0 %v2118_v55  ;;  %v432_v22 = vand.u32 7, %v2662_v54 }
  0x84   : > { %1967 = vmatpush1.bf16.msra.mxu1 %v2118_v55 }
  0x85   : > { %vm2702_vm6 = vcmp.eq.s32.totalorder %v432_v22, 0 }
  0x86   : > { %1312 = vmatmul.mubr.bf16.vlgmr.msra.gmra.mrb[16].mxu0 %v2428_v46 }
  0x87   : > { %1332 = vmatmul.mubr.bf16.vlgmr.msra.gmra.mrb[16].mxu1 %v2484_v25  ;;  %1321 = vmatprep.mubr.bf16.mxu0 %v2440_v53 }
  0x88   : > { %1341 = vmatprep.mubr.bf16.mxu1 %v2494_v29 }
  0x8e   : > { %1322 = vmatmul.mubr.bf16.gmra.mrb[20].mxu0 %v2460_v7 }
  0x8f   : > { %1342 = vmatmul.mubr.bf16.gmra.mrb[20].mxu1 %v2506_v33 }
 0x119   : > { %v2578_v60 = vpop.f32.mrb[0].mxu0 }
 0x11a   : > { %v2580_v61 = vpop.f32.mrb[0].mxu1  ;;  %v780_v46 = vrot.slane %v2578_v60, 7  ;;  %v2583_v62 = vpop.f32.mrb[1].mxu0 }
 0x11b   : > { %v2585_v53 = vpop.f32.mrb[1].mxu1  ;;  %v745_v1 = vpop.f32.mrb[2].mxu0  ;;  %v781_v7 = vrot.slane %v2583_v62, 7 }
 0x11c   : > { %v1051_v2 = vpop.f32.mrb[2].mxu1  ;;  %v782_v3 = vrot.slane %v745_v1, 7  ;;  %v747_v4 = vpop.f32.mrb[3].mxu0 }
 0x11d   : > { %v1053_v5 = vpop.f32.mrb[3].mxu1  ;;  %v783_v8 = vrot.slane %v747_v4, 7 }
 0x11e   : > { %v809_v9 = vsel %vm796_vm0, %v780_v46, %v782_v3 }
 0x11f   : > { %v839_v11 = vsel %vm814_vm1, 0.0, %v809_v9  ;;  %v810_v13 = vsel %vm796_vm0, %v781_v7, %v783_v8 }
 0x120   : > { %v2606_v56 = vadd.f32 %v1051_v2, %v839_v11  ;;  %v840_v14 = vsel %vm814_vm1, 0.0, %v810_v13  ;;  %v2673_v11 = vadd.s32 56, %v2296_v40 }
 0x121   : > { %v2609_v16 = vadd.f32 %v1053_v5, %v840_v14  ;;  %v751_v18 = vpop.f32.mrb[4].mxu0 }
 0x122   : > { %v1057_v19 = vpop.f32.mrb[4].mxu1  ;;  %v784_v20 = vrot.slane %v751_v18, 7  ;;  %v753_v21 = vpop.f32.mrb[5].mxu0 }
 0x123   : > { %v1059_v57 = vpop.f32.mrb[5].mxu1  ;;  %v785_v24 = vrot.slane %v753_v21, 7  ;;  %v755_v25 = vpop.f32.mrb[6].mxu0 }
 0x124   : > { %v1061_v0 = vpop.f32.mrb[6].mxu1  ;;  %v807_v26 = vsel %vm796_vm0, %v782_v3, %v784_v20  ;;  %v786_v27 = vrot.slane %v755_v25, 7  ;;  %v757_v28 = vpop.f32.mrb[7].mxu0 }
 0x125   : > { %v1063_v30 = vpop.f32.mrb[7].mxu1  ;;  %v841_v12 = vsel %vm2613_vm2, 0.0, %v807_v26  ;;  %v808_v32 = vsel %vm796_vm0, %v783_v8, %v785_v24  ;;  %v787_v33 = vrot.slane %v757_v28, 7  ;;  %v439_v28 = vand.u32 7, %v2673_v11 }
 0x126   : > { %v2635_v34 = vadd.f32 %v1057_v19, %v841_v12  ;;  %v842_v35 = vsel %vm2613_vm2, 0.0, %v808_v32  ;;  %v805_v37 = vsel %vm796_vm0, %v784_v20, %v786_v27  ;;  %vm1487_vm2 = vcmp.lt.s32.totalorder %v299_v36, 256 }
 0x127   : > { %v2642_v39 = vadd.f32 %v1059_v57, %v842_v35  ;;  %v843_v41 = vsel %vm2624_vm3, 0.0, %v805_v37  ;;  %v806_v42 = vsel %vm796_vm0, %v785_v24, %v787_v33  ;;  %vm2714_vm8 = vcmp.eq.s32.totalorder %v439_v28, 0 }
 0x128   : > { %v2648_v17 = vadd.f32 %v1061_v0, %v843_v41  ;;  %v844_v43 = vsel %vm2624_vm3, 0.0, %v806_v42  ;;  %v390_v0 = vand.u32 7, %v2296_v40  ;;  %vm2847_vm1 = vcmp.eq.s32.totalorder %v439_v28, 7 }
 0x129   : > { %v761_v45 = vpop.f32.mrb[8].mxu0  ;;  %v2653_v47 = vadd.f32 %v1063_v30, %v844_v43 }
 0x12a   : > { %v1067_v48 = vpop.f32.mrb[8].mxu1  ;;  %v788_v49 = vrot.slane %v761_v45, 7  ;;  %v763_v50 = vpop.f32.mrb[9].mxu0  ;;  %vm2706_vm7 = vcmp.eq.s32.totalorder %v390_v0, 0  ;;  %vm2772_vm11 = vcmp.eq.s32.totalorder %v390_v0, 7 }
 0x12b   : > { %v1069_v52 = vpop.f32.mrb[9].mxu1  ;;  %v789_v55 = vrot.slane %v763_v50, 7  ;;  %v765_v1 = vpop.f32.mrb[10].mxu0 }
 0x12c   : > { %v1071_v2 = vpop.f32.mrb[10].mxu1  ;;  %v790_v3 = vrot.slane %v765_v1, 7  ;;  %v767_v4 = vpop.f32.mrb[11].mxu0  ;;  %v803_v5 = vsel %vm796_vm0, %v786_v27, %v788_v49 }
 0x12d   : > { %v1073_v9 = vpop.f32.mrb[11].mxu1  ;;  %v791_v13 = vrot.slane %v767_v4, 7  ;;  %v845_v14 = vsel %vm2657_vm4, 0.0, %v803_v5  ;;  %v804_v18 = vsel %vm796_vm0, %v787_v33, %v789_v55 }
 0x12e   : > { %v2679_v19 = vadd.f32 %v1067_v48, %v845_v14  ;;  %v846_v20 = vsel %vm2657_vm4, 0.0, %v804_v18  ;;  %v801_v21 = vsel %vm796_vm0, %v788_v49, %v790_v3 }
 0x12f   : > { %v2686_v57 = vadd.f32 %v1069_v52, %v846_v20  ;;  %v847_v24 = vsel %vm2668_vm5, 0.0, %v801_v21  ;;  %v802_v25 = vsel %vm796_vm0, %v789_v55, %v791_v13 }
 0x130   : > { %v2693_v26 = vadd.f32 %v1071_v2, %v847_v24  ;;  %v848_v27 = vsel %vm2668_vm5, 0.0, %v802_v25 }
 0x131   : > { %v771_v29 = vpop.f32.mrb[12].mxu0  ;;  %v2698_v30 = vadd.f32 %v1073_v9, %v848_v27 }
 0x132   : > { %v1077_v12 = vpop.f32.mrb[12].mxu1  ;;  %v792_v32 = vrot.slane %v771_v29, 7  ;;  %v773_v33 = vpop.f32.mrb[13].mxu0 }
 0x133   : > { %v1079_v37 = vpop.f32.mrb[13].mxu1  ;;  %v793_v41 = vrot.slane %v773_v33, 7  ;;  %v775_v42 = vpop.f32.mrb[14].mxu0 }
 0x134   : > { %v1081_v43 = vpop.f32.mrb[14].mxu1  ;;  %v794_v45 = vrot.slane %v775_v42, 7  ;;  %v777_v49 = vpop.f32.mrb[15].mxu0  ;;  %v799_v50 = vsel %vm796_vm0, %v790_v3, %v792_v32 }
 0x135   : > { %v1083_v52 = vpop.f32.mrb[15].mxu1  ;;  %v795_v55 = vrot.slane %v777_v49, 7  ;;  %v849_v1 = vsel %vm2702_vm6, 0.0, %v799_v50  ;;  %v800_v2 = vsel %vm796_vm0, %v791_v13, %v793_v41 }
 0x136   : > { %v811_v4 = vsel %vm796_vm0, %v794_v45, %v780_v46  ;;  %v2726_v3 = vadd.f32 %v1077_v12, %v849_v1  ;;  %v850_v5 = vsel %vm2702_vm6, 0.0, %v800_v2  ;;  %v797_v8 = vsel %vm796_vm0, %v792_v32, %v794_v45 }
 0x137   : > { %v837_v9 = vsel %vm2706_vm7, 0.0, %v811_v4  ;;  %v812_v13 = vsel %vm796_vm0, %v795_v55, %v781_v7  ;;  %v2738_v60 = vadd.f32 %v1079_v37, %v850_v5  ;;  %v851_v46 = vsel %vm2714_vm8, 0.0, %v797_v8 }
 0x138   : > { %v1048_v14 = vadd.f32 %v2580_v61, %v837_v9  ;;  %v838_v18 = vsel %vm2706_vm7, 0.0, %v812_v13  ;;  %v2745_v20 = vadd.f32 %v1081_v43, %v851_v46  ;;  %v798_v21 = vsel %vm796_vm0, %v793_v41, %v795_v55 }
 0x139   : > { %v1050_v62 = vadd.f32 %v2585_v53, %v838_v18  ;;  %v852_v7 = vsel %vm2714_vm8, 0.0, %v798_v21  ;;  %vm2834_vm0 = vcmp.eq.s32.totalorder %v432_v22, 7 }
 0x13a   : > { %v2752_v24 = vadd.f32 %v1083_v52, %v852_v7 }
 0x159   : > { %v2754_v25 = vpop.f32.mrb[16].mxu0 }
 0x15a   : > { %v2756_v27 = vpop.f32.mrb[16].mxu1  ;;  %v2759_v29 = vpop.f32.mrb[17].mxu0  ;;  %v1352_v37 = vrot.slane %v2754_v25, 1 }
 0x15b   : > { %v1360_v61 = vrot.slane %v2756_v27, 1  ;;  %v2761_v12 = vpop.f32.mrb[17].mxu1  ;;  %v1317_v33 = vpop.f32.mrb[18].mxu0  ;;  %v1353_v45 = vrot.slane %v2759_v29, 1 }
 0x15c   : > { %v1361_v53 = vrot.slane %v2761_v12, 1  ;;  %v1337_v35 = vpop.f32.mrb[18].mxu1  ;;  %v1354_v41 = vrot.slane %v1317_v33, 1  ;;  %v1319_v23 = vpop.f32.mrb[19].mxu0 }
 0x15d   : > { %v1362_v43 = vrot.slane %v1337_v35, 1  ;;  %v1339_v38 = vpop.f32.mrb[19].mxu1  ;;  %v1355_v48 = vrot.slane %v1319_v23, 1 }
 0x15e   : > { %v1363_v49 = vrot.slane %v1339_v38, 1  ;;  %v1381_v0 = vsel %vm1368_vm10, %v1352_v37, %v1354_v41 }
 0x15f   : > { %v1373_v51 = vsel %vm1368_vm10, %v1360_v61, %v1362_v43  ;;  %v1409_v52 = vsel %vm2772_vm11, 0.0, %v1381_v0  ;;  %v1382_v59 = vsel %vm1368_vm10, %v1353_v45, %v1355_v48 }
 0x160   : > { %v1417_v58 = vsel %vm2765_vm9, 0.0, %v1373_v51  ;;  %v1374_v55 = vsel %vm1368_vm10, %v1361_v53, %v1363_v49  ;;  %v1425_v1 = vadd.f32 %v1409_v52, %v1048_v14  ;;  %v1410_v4 = vsel %vm2772_vm11, 0.0, %v1382_v59 }
 0x161   : > { %v2805_v2 = vadd.f32 %v1417_v58, %v2679_v19  ;;  %v1418_v5 = vsel %vm2765_vm9, 0.0, %v1374_v55  ;;  %v1426_v19 = vadd.f32 %v1410_v4, %v1050_v62  ;;  %v1323_v46 = vpop.f32.mrb[20].mxu0 }
 0x162   : > { %v2824_v13 = vadd.f32 %v1418_v5, %v2686_v57  ;;  %v1343_v14 = vpop.f32.mrb[20].mxu1  ;;  %v1356_v10 = vrot.slane %v1323_v46, 1  ;;  %v1325_v31 = vpop.f32.mrb[21].mxu0  ;;  %v1490_v22 = vmul.f32 %v1425_v1, %v1425_v1 }
 0x163   : > { %v1364_v15 = vrot.slane %v1343_v14, 1  ;;  %v2843_v44 = vpop.f32.mrb[21].mxu1  ;;  %v1928_v57 = vpack.c.bf16 %v1426_v19, %v1425_v1  ;;  %v1327_v21 = vpop.f32.mrb[22].mxu0  ;;  %v1357_v33 = vrot.slane %v1325_v31, 1 }
 0x164   : > { %v1932_v18 = vpack.c.bf16 %v2824_v13, %v2805_v2  ;;  %v1347_v62 = vpop.f32.mrb[22].mxu1  ;;  %v1379_v7 = vsel %vm1368_vm10, %v1354_v41, %v1356_v10  ;;  %v1365_v11 = vrot.slane %v2843_v44, 1  ;;  %v1329_v28 = vpop.f32.mrb[23].mxu0  ;;  %v1358_v38 = vrot.slane %v1327_v21, 1 }
 0x165   : > { %v1371_v32 = vsel %vm1368_vm10, %v1362_v43, %v1364_v15  ;;  %v2858_v35 = vpop.f32.mrb[23].mxu1  ;;  %1615 = vst [vmem:[%s2841_s12] sm:$0xff] %v1928_v57  ;;  %v1411_v42 = vsel %vm2779_vm12, 0.0, %v1379_v7  ;;  %v1366_v0 = vrot.slane %v1347_v62, 1  ;;  %v1380_v51 = vsel %vm1368_vm10, %v1355_v48, %v1357_v33 }
 0x166   : > { %1619 = vst [vmem:[%s2841_s12 + $0x20] sm:$0xff] %v1932_v18  ;;  %v1419_v23 = vsel %vm2828_vm15, 0.0, %v1371_v32  ;;  %v1427_v41 = vadd.f32 %v1411_v42, %v2606_v56  ;;  %v1372_v52 = vsel %vm1368_vm10, %v1363_v49, %v1365_v11  ;;  %v1412_v58 = vsel %vm2779_vm12, 0.0, %v1380_v51 }
 0x167   : > { %v1435_v43 = vadd.f32 %v1419_v23, %v2693_v26  ;;  %v1420_v59 = vsel %vm2828_vm15, 0.0, %v1372_v52  ;;  %v1375_v56 = vsel %vm1368_vm10, %v1358_v38, %v1360_v61  ;;  %v1377_v26 = vsel %vm1368_vm10, %v1356_v10, %v1358_v38 }
 0x168   : > { %v1491_v48 = vmul.f32 %v1426_v19, %v1426_v19  ;;  %v1441_v55 = vadd.f32 %v1427_v41, %v1425_v1  ;;  %v1492_v4 = vmul.f32 %v1427_v41, %v1427_v41  ;;  %v1428_v49 = vadd.f32 %v1412_v58, %v2609_v16 }
 0x169   : > { %v2886_v50 = vadd.f32 %v1420_v59, %v2698_v30  ;;  %v1413_v5 = vsel %vm2813_vm13, 0.0, %v1377_v26  ;;  %v1415_v27 = vsel %vm2819_vm14, 0.0, %v1375_v56  ;;  %v1369_v61 = vsel %vm1368_vm10, %v1364_v15, %v1366_v0 }
 0x16a   : > { %v1506_v46 = vadd.f32 %v1492_v4, %v1490_v22  ;;  %v1454_v14 = vadd.f32 %v1428_v49, %v1426_v19  ;;  %v1493_v63 = vmul.f32 %v1428_v49, %v1428_v49  ;;  %v1929_v1 = vpack.c.bf16 %v1428_v49, %v1427_v41 }
 0x16b   : > { %v1933_v10 = vpack.c.bf16 %v2886_v50, %v1435_v43  ;;  %v1429_v16 = vadd.f32 %v1413_v5, %v2635_v34  ;;  %v1431_v30 = vadd.f32 %v1415_v27, %v2648_v17  ;;  %v1383_v57 = vsel %vm1368_vm10, %v1366_v0, %v1352_v37 }
 0x16c   : > { %v1519_v31 = vadd.f32 %v1493_v63, %v1491_v48  ;;  %1616 = vst [vmem:[%s2841_s12 + $0x8] sm:$0xff] %v1929_v1  ;;  %v1421_v15 = vsel %vm2834_vm0, 0.0, %v1369_v61  ;;  %v1359_v22 = vrot.slane %v1329_v28, 1  ;;  %v1423_v34 = vsel %vm2847_vm1, 0.0, %v1383_v57 }
 0x16d   : > { %1620 = vst [vmem:[%s2841_s12 + $0x28] sm:$0xff] %v1933_v10  ;;  %v1442_v19 = vadd.f32 %v1441_v55, %v1429_v16  ;;  %v1494_v18 = vmul.f32 %v1429_v16, %v1429_v16  ;;  %v1496_v21 = vmul.f32 %v1431_v30, %v1431_v30  ;;  %v1437_v17 = vadd.f32 %v1421_v15, %v2726_v3 }
 0x16e   : > { %v1439_v62 = vadd.f32 %v1423_v34, %v2745_v20  ;;  %v1376_v25 = vsel %vm1368_vm10, %v1359_v22, %v1361_v53  ;;  %v1378_v37 = vsel %vm1368_vm10, %v1357_v33, %v1359_v22  ;;  %v1498_v3 = vmul.f32 %v2805_v2, %v2805_v2 }
 0x16f   : > { %v1443_v7 = vadd.f32 %v1442_v19, %v1431_v30  ;;  %v1507_v32 = vadd.f32 %v1506_v46, %v1494_v18  ;;  %v1414_v28 = vsel %vm2813_vm13, 0.0, %v1378_v37  ;;  %v1416_v42 = vsel %vm2819_vm14, 0.0, %v1376_v25 }
 0x170   : > { %v1500_v20 = vmul.f32 %v1435_v43, %v1435_v43  ;;  %v1430_v12 = vadd.f32 %v1414_v28, %v2642_v39  ;;  %v1432_v53 = vadd.f32 %v1416_v42, %v2653_v47  ;;  %v1502_v38 = vmul.f32 %v1437_v17, %v1437_v17 }
 0x171   : > { %v1444_v23 = vadd.f32 %v1443_v7, %v2805_v2  ;;  %v1508_v33 = vadd.f32 %v1507_v32, %v1496_v21  ;;  %v1367_v0 = vrot.slane %v2858_v35, 1  ;;  %v1504_v4 = vmul.f32 %v1439_v62, %v1439_v62 }
 0x172   : > { %v1455_v8 = vadd.f32 %v1454_v14, %v1430_v12  ;;  %v1495_v41 = vmul.f32 %v1430_v12, %v1430_v12  ;;  %v1497_v9 = vmul.f32 %v1432_v53, %v1432_v53  ;;  %v1930_v51 = vpack.c.bf16 %v1430_v12, %v1429_v16 }
 0x173   : > { %v1509_v52 = vadd.f32 %v1508_v33, %v1498_v3  ;;  %v1445_v58 = vadd.f32 %v1444_v23, %v1435_v43  ;;  %v1931_v59 = vpack.c.bf16 %v1432_v53, %v1431_v30  ;;  %v1370_v39 = vsel %vm1368_vm10, %v1365_v11, %v1367_v0 }
 0x174   : > { %v1456_v47 = vadd.f32 %v1455_v8, %v1432_v53  ;;  %v1520_v56 = vadd.f32 %v1519_v31, %v1495_v41  ;;  %1617 = vst [vmem:[%s2841_s12 + $0x10] sm:$0xff] %v1930_v51  ;;  %v1384_v2 = vsel %vm1368_vm10, %v1367_v0, %v1353_v45  ;;  %v1422_v35 = vsel %vm2834_vm0, 0.0, %v1370_v39 }
 0x175   : > { %v1446_v26 = vadd.f32 %v1445_v58, %v1437_v17  ;;  %v1510_v48 = vadd.f32 %v1509_v52, %v1500_v20  ;;  %1618 = vst [vmem:[%s2841_s12 + $0x18] sm:$0xff] %v1931_v59  ;;  %v1424_v44 = vsel %vm2847_vm1, 0.0, %v1384_v2  ;;  %v1438_v11 = vadd.f32 %v1422_v35, %v2738_v60 }
 0x176   : > { %v1499_v43 = vmul.f32 %v2824_v13, %v2824_v13  ;;  %v1457_v29 = vadd.f32 %v1456_v47, %v2824_v13  ;;  %v1521_v55 = vadd.f32 %v1520_v56, %v1497_v9  ;;  %v1440_v45 = vadd.f32 %v1424_v44, %v2752_v24 }
 0x177   : > { %v1447_v6 = vadd.f32 %v1446_v26, %v1439_v62  ;;  %v1511_v49 = vadd.f32 %v1510_v48, %v1502_v38  ;;  %v1934_v5 = vpack.c.bf16 %v1438_v11, %v1437_v17  ;;  %v1501_v54 = vmul.f32 %v2886_v50, %v2886_v50 }
 0x178   : > { %v1522_v27 = vadd.f32 %v1521_v55, %v1499_v43  ;;  %v1458_v61 = vadd.f32 %v1457_v29, %v2886_v50  ;;  %v1935_v60 = vpack.c.bf16 %v1440_v45, %v1439_v62  ;;  %v1503_v13 = vmul.f32 %v1438_v11, %v1438_v11 }
 0x179   : > { %v1448_v46 = vrot.slane %v1447_v6, 4  ;;  %v1512_v14 = vadd.f32 %v1511_v49, %v1504_v4  ;;  %1621 = vst [vmem:[%s2841_s12 + $0x30] sm:$0xff] %v1934_v5  ;;  %v1505_v30 = vmul.f32 %v1440_v45, %v1440_v45  ;;  %v2129_v34 = vmov 1966171168  }
 0x17a   : > { %v1459_v63 = vadd.f32 %v1458_v61, %v1438_v11  ;;  %v1523_v1 = vadd.f32 %v1522_v27, %v1501_v54  ;;  %1622 = vst [vmem:[%s2841_s12 + $0x38] sm:$0xff] %v1935_v60  ;;  %v1471_v17 = vunpack.c.l.s4 %v2129_v34 }
 0x17b   : > { %v1449_v10 = vadd.f32 %v1448_v46, %v1447_v6  ;;  %v1513_v24 = vrot.slane %v1512_v14, 4 }
 0x17c   : > { %v1460_v16 = vadd.f32 %v1459_v63, %v1440_v45  ;;  %v1524_v31 = vadd.f32 %v1523_v1, %v1503_v13  ;;  %v1472_v3 = vunpack.c.0.s8 %v1471_v17 }
 0x17d   : > { %v1450_v57 = vrot.slane %v1449_v10, 2  ;;  %v1514_v15 = vadd.f32 %v1513_v24, %v1512_v14 }
 0x17e   : > { %v1461_v22 = vrot.slane %v1460_v16, 4  ;;  %v1525_v19 = vadd.f32 %v1524_v31, %v1505_v30  ;;  %v1475_v0 = vsub.s32 %v1472_v3, %v2296_v40 }
 0x17f   : > { %v1451_v18 = vadd.f32 %v1450_v57, %v1449_v10  ;;  %v1515_v50 = vrot.slane %v1514_v15, 2 }
 0x180   : > { %v1462_v21 = vadd.f32 %v1461_v22, %v1460_v16  ;;  %v1526_v62 = vrot.slane %v1525_v19, 4 }
 0x181   : > { %v1516_v25 = vadd.f32 %v1515_v50, %v1514_v15  ;;  %v1452_v37 = vrot.slane %v1451_v18, 1 }
 0x182   : > { %v1463_v7 = vrot.slane %v1462_v21, 2  ;;  %v1527_v32 = vadd.f32 %v1526_v62, %v1525_v19 }
 0x183   : > { %v1517_v28 = vrot.slane %v1516_v25, 1  ;;  %v1453_v12 = vadd.f32 %v1452_v37, %v1451_v18 }
 0x184   : > { %v1464_v42 = vadd.f32 %v1463_v7, %v1462_v21  ;;  %v1528_v20 = vrot.slane %v1527_v32, 2 }
 0x185   : > { %v1518_v33 = vadd.f32 %v1517_v28, %v1516_v25 }
 0x186   : > { %v1465_v53 = vrot.slane %v1464_v42, 1  ;;  %v1529_v23 = vadd.f32 %v1528_v20, %v1527_v32 }
 0x188   : > { %v1466_v38 = vadd.f32 %v1465_v53, %v1464_v42  ;;  %v1530_v8 = vrot.slane %v1529_v23, 1 }
 0x18a   : > { %v1469_v41 = vcombine.low %v1453_v12, %v1466_v38  ;;  %v1531_v9 = vadd.f32 %v1530_v8, %v1529_v23 }
 0x18c   : > { %v1476_v51 = vrot.slane %v1469_v41, %v1475_v0  ;;  %v1534_v52 = vcombine.low %v1518_v33, %v1531_v9 }
 0x18e   : > { %v1483_v58 = vrot.slane %v1476_v51, %v1475_v0  ;;  %v1541_v59 = vrot.slane %v1534_v52, %v1475_v0 }
 0x190   : > { %1489 = vst.msk [vmem:[%s276_s17] sm:$0x3] %vm1487_vm2, %v1483_v58  ;;  %v1548_v40 = vrot.slane %v1541_v59, %v1475_v0 }
 0x192   : > { %1550 = vst.msk [vmem:[%s280_s20] sm:$0x3] %vm1487_vm2, %v1548_v40 }
 0x193 PF: > { %s17_s21 = sadd.s32 1, %s2127_s21  }
 0x194   : > { %p14_p5 = scmp.ge.s32.totalorder %s17_s21, 4  }
 0x196   :  { %16 = sbr.rel (!%p14_p5) target bundleno = 1 (0x1), region = 92 }

// kernel: basic_block_forward.3
= control target key start
LH: loop header
LB: loop body
LE: loop exit
PB: predicated region body
PF: predicated region fallthrough
CT: control target
= control target key end

     0   :  { %s1945_s18 = smov 0   ;;  %s2737_s0 = inlined_call_operand.vmem [shape: bf16[16,8,256], index: 0, kind: input, shape index: {}]   ;;  %s2738_s1 = inlined_call_operand.vmem [shape: f32[1,1,256], index: 1, kind: input, shape index: {}]   ;;  %s2739_s2 = inlined_call_operand.vmem [shape: f32[1,1,256], index: 2, kind: input, shape index: {}]   ;;  %s2740_s3 = inlined_call_operand.vmem [shape: bf16[3,256,256], index: 3, kind: input, shape index: {}]   ;;  %s2741_s4 = inlined_call_operand.vmem [shape: f32[16,8,256], index: 4, kind: input, shape index: {}]   ;;  %s2742_s5 = inlined_call_operand.vmem [shape: f32[16,8,256], index: 5, kind: output, shape index: {}]  }
   0x1 LB: > { %s1544_s19 = sadd.s32 4294967295, %s1913_s18   ;;  %p1548_p0 = scmp.ge.s32.totalorder %s1913_s18, 1  ;;  %s1913_s18 = sphi %s1945_s18, %s15_s18  }
   0x2   : > { %p201_p1 = scmp.lt.s32.totalorder %s1913_s18, 3 }
   0x4   : > { %p202_p2 = pnand %p1548_p0, %p201_p1 }
   0x5   : > { %v1763_v0 = vld [vmem:[%s2740_s3 + $0x4] ss:$8 sps:$4 sm:$0xff] (!%p202_p2)   ;;  %v1767_v2 = vld [vmem:[%s2740_s3] ss:$8 sps:$4 sm:$0xff] (!%p202_p2)   ;;  %v1769_v4 = vld [vmem:[%s2740_s3 + $0x14] ss:$8 sps:$4 sm:$0xff] (!%p202_p2)   ;;  %v284_v36 = vlaneseq (!%p202_p2) }
   0x6   : > { %205 = sbr.rel (%p202_p2) target bundleno = 374 (0x176), region = 40  ;;  %v1765_v1 = vld [vmem:[%s2740_s3 + $0x104] ss:$8 sps:$4 sm:$0xff] (!%p202_p2)   ;;  %692 = vmatprep.subr.bf16.mxu0 (!%p202_p2), %v1763_v0  ;;  %v1768_v3 = vld [vmem:[%s2740_s3 + $0x100] ss:$8 sps:$4 sm:$0xff] (!%p202_p2)   ;;  %s1549_s9 = sshll.u32 (!%p202_p2), %s1544_s19, 3 }
   0x7   : > { %998 = vmatprep.subr.bf16.mxu1 (!%p202_p2), %v1765_v1  ;;  %693 = vmatpush1.bf16.msra.mxu0 (!%p202_p2), %v1767_v2  ;;  %v1771_v5 = vld [vmem:[%s2740_s3 + $0x114] ss:$8 sps:$4 sm:$0xff] (!%p202_p2)   ;;  %v1773_v6 = vld [vmem:[%s2740_s3 + $0x10] ss:$8 sps:$4 sm:$0xff] (!%p202_p2)   ;;  %v1775_v8 = vld [vmem:[%s2740_s3 + $0x24] ss:$8 sps:$4 sm:$0xff] (!%p202_p2)  }
   0x8   : > { %999 = vmatpush1.bf16.msra.mxu1 (!%p202_p2), %v1768_v3  ;;  %694 = vmatprep.subr.bf16.mxu0 (!%p202_p2), %v1769_v4  ;;  %v1774_v7 = vld [vmem:[%s2740_s3 + $0x110] ss:$8 sps:$4 sm:$0xff] (!%p202_p2)   ;;  %v1777_v9 = vld [vmem:[%s2740_s3 + $0x124] ss:$8 sps:$4 sm:$0xff] (!%p202_p2)   ;;  %v1779_v10 = vld [vmem:[%s2740_s3 + $0x20] ss:$8 sps:$4 sm:$0xff] (!%p202_p2)  }
   0x9   : > { %1000 = vmatprep.subr.bf16.mxu1 (!%p202_p2), %v1771_v5  ;;  %v1780_v11 = vld [vmem:[%s2740_s3 + $0x120] ss:$8 sps:$4 sm:$0xff] (!%p202_p2)   ;;  %v1781_v12 = vld [vmem:[%s2740_s3 + $0x34] ss:$8 sps:$4 sm:$0xff] (!%p202_p2)   ;;  %v1785_v14 = vld [vmem:[%s2740_s3 + $0x30] ss:$8 sps:$4 sm:$0xff] (!%p202_p2)  }
   0xa   : > { %v1783_v13 = vld [vmem:[%s2740_s3 + $0x134] ss:$8 sps:$4 sm:$0xff] (!%p202_p2)   ;;  %v1786_v15 = vld [vmem:[%s2740_s3 + $0x130] ss:$8 sps:$4 sm:$0xff] (!%p202_p2)   ;;  %v1787_v16 = vld [vmem:[%s2740_s3 + $0x44] ss:$8 sps:$4 sm:$0xff] (!%p202_p2)  }
   0xb   : > { %695 = vmatpush1.bf16.msra.mxu0 (!%p202_p2), %v1773_v6  ;;  %v1789_v17 = vld [vmem:[%s2740_s3 + $0x144] ss:$8 sps:$4 sm:$0xff] (!%p202_p2)   ;;  %v1791_v18 = vld [vmem:[%s2740_s3 + $0x40] ss:$8 sps:$4 sm:$0xff] (!%p202_p2)   ;;  %v1793_v20 = vld [vmem:[%s2740_s3 + $0x54] ss:$8 sps:$4 sm:$0xff] (!%p202_p2)  }
   0xc   : > { %1001 = vmatpush1.bf16.msra.mxu1 (!%p202_p2), %v1774_v7  ;;  %696 = vmatprep.subr.bf16.mxu0 (!%p202_p2), %v1775_v8  ;;  %v1792_v19 = vld [vmem:[%s2740_s3 + $0x140] ss:$8 sps:$4 sm:$0xff] (!%p202_p2)   ;;  %v1795_v21 = vld [vmem:[%s2740_s3 + $0x154] ss:$8 sps:$4 sm:$0xff] (!%p202_p2)   ;;  %v1797_v22 = vld [vmem:[%s2740_s3 + $0x50] ss:$8 sps:$4 sm:$0xff] (!%p202_p2)  }
   0xd   : > { %1002 = vmatprep.subr.bf16.mxu1 %v1777_v9  ;;  %v1798_v23 = vld [vmem:[%s2740_s3 + $0x150] ss:$8 sps:$4 sm:$0xff]   ;;  %v1799_v24 = vld [vmem:[%s2740_s3 + $0x64] ss:$8 sps:$4 sm:$0xff]   ;;  %v1803_v26 = vld [vmem:[%s2740_s3 + $0x60] ss:$8 sps:$4 sm:$0xff]  }
   0xe   : > { %v1801_v25 = vld [vmem:[%s2740_s3 + $0x164] ss:$8 sps:$4 sm:$0xff]   ;;  %v1804_v27 = vld [vmem:[%s2740_s3 + $0x160] ss:$8 sps:$4 sm:$0xff]   ;;  %v1805_v28 = vld [vmem:[%s2740_s3 + $0x74] ss:$8 sps:$4 sm:$0xff]  }
   0xf   : > { %697 = vmatpush1.bf16.msra.mxu0 %v1779_v10  ;;  %v1807_v29 = vld [vmem:[%s2740_s3 + $0x174] ss:$8 sps:$4 sm:$0xff]   ;;  %v1809_v30 = vld [vmem:[%s2740_s3 + $0x70] ss:$8 sps:$4 sm:$0xff]   ;;  %v1811_v32 = vld [vmem:[%s2740_s3 + $0x84] ss:$8 sps:$4 sm:$0xff]  }
  0x10   : > { %1003 = vmatpush1.bf16.msra.mxu1 %v1780_v11  ;;  %698 = vmatprep.subr.bf16.mxu0 %v1781_v12  ;;  %v1810_v31 = vld [vmem:[%s2740_s3 + $0x170] ss:$8 sps:$4 sm:$0xff]   ;;  %p238_p3 = scmp.lt.s32.totalorder %s1549_s9, 15  ;;  %v1813_v33 = vld [vmem:[%s2740_s3 + $0x184] ss:$8 sps:$4 sm:$0xff]   ;;  %v2074_v40 = vshrl.u32 %v284_v36, 7 }
  0x11   : > { %1004 = vmatprep.subr.bf16.mxu1 %v1783_v13  ;;  %v1815_v34 = vld [vmem:[%s2740_s3 + $0x80] ss:$8 sps:$4 sm:$0xff]   ;;  %v1817_v37 = vld [vmem:[%s2740_s3 + $0x94] ss:$8 sps:$4 sm:$0xff]   ;;  %v1821_v39 = vld [vmem:[%s2740_s3 + $0x90] ss:$8 sps:$4 sm:$0xff]  }
  0x12   : > { %v1816_v35 = vld [vmem:[%s2740_s3 + $0x180] ss:$8 sps:$4 sm:$0xff]   ;;  %s2774_s9 = smov (!%p238_p3, %s1549_s9), 15  ;;  %v1819_v38 = vld [vmem:[%s2740_s3 + $0x194] ss:$8 sps:$4 sm:$0xff]   ;;  %v290_v47 = vsub.s32 1, %v2074_v40 }
  0x13   : > { %699 = vmatpush1.bf16.msra.mxu0 %v1785_v14  ;;  %v1822_v41 = vld [vmem:[%s2740_s3 + $0x190] ss:$8 sps:$4 sm:$0xff]   ;;  %v1823_v42 = vld [vmem:[%s2740_s3 + $0xa4] ss:$8 sps:$4 sm:$0xff]   ;;  %s1720_s8 = sshll.u32 %s2774_s9, 3  ;;  %v286_v56 = vsub.s32 0, %v2074_v40 }
  0x14   : > { %1005 = vmatpush1.bf16.msra.mxu1 %v1786_v15  ;;  %700 = vmatprep.subr.bf16.mxu0 %v1787_v16  ;;  %v1825_v43 = vld [vmem:[%s2740_s3 + $0x1a4] ss:$8 sps:$4 sm:$0xff]   ;;  %v1827_v44 = vld [vmem:[%s2740_s3 + $0xa0] ss:$8 sps:$4 sm:$0xff]   ;;  %s2095_s19 = scalar_lea.vmem %s2737_s0, %s1720_s8  ;;  %v1829_v46 = vld [vmem:[%s2740_s3 + $0xb4] ss:$8 sps:$4 sm:$0xff]  }
  0x15   : > { %1006 = vmatprep.subr.bf16.mxu1 %v1789_v17  ;;  %v1828_v45 = vld [vmem:[%s2740_s3 + $0x1a0] ss:$8 sps:$4 sm:$0xff]   ;;  %v1831_v48 = vld [vmem:[%s2740_s3 + $0x1b4] ss:$8 sps:$4 sm:$0xff]   ;;  %v1833_v49 = vld [vmem:[%s2740_s3 + $0xb0] ss:$8 sps:$4 sm:$0xff]  }
  0x16   : > { %v1834_v50 = vld [vmem:[%s2740_s3 + $0x1b0] ss:$8 sps:$4 sm:$0xff]   ;;  %v258_v51 = vld [vmem:[%s2095_s19] sm:$0xff]  ;;  %v259_v52 = vld [vmem:[%s2095_s19 + $0x8] sm:$0xff]  ;;  %vm781_vm0 = vcmp.lt.s32.totalorder %v2074_v40, 1  ;;  %s1721_s13 = sshll.u32 %s2774_s9, 4 }
  0x17   : > { %701 = vmatpush1.bf16.msra.mxu0 %v1791_v18  ;;  %v267_v53 = vunpack.c.h.bf16 %v258_v51  ;;  %v282_v54 = vld [vmem:[%s2738_s1] sm:$0x3]  ;;  %v1835_v57 = vld [vmem:[%s2740_s3 + $0xc4] ss:$8 sps:$4 sm:$0xff]   ;;  %v269_v58 = vunpack.c.h.bf16 %v259_v52  ;;  %v260_v0 = vld [vmem:[%s2095_s19 + $0x10] sm:$0xff]  ;;  %v266_v1 = vunpack.c.l.bf16 %v258_v51  ;;  %v268_v2 = vunpack.c.l.bf16 %v259_v52  ;;  %s2555_s16 = scalar_lea.vmem %s2741_s4, %s1721_s13  ;;  %s2613_s21 = scalar_lea.vmem %s2742_s5, %s1721_s13 }
  0x18   : > { %1007 = vmatpush1.bf16.msra.mxu1 %v1792_v19  ;;  %702 = vmatprep.subr.bf16.mxu0 %v1793_v20  ;;  %v310_v55 = vld [vmem:[%s2739_s2] sm:$0x3]  ;;  %v2122_v59 = vrot.slane %v282_v54, %v290_v47  ;;  %v1837_v61 = vld [vmem:[%s2740_s3 + $0x1c4] ss:$8 sps:$4 sm:$0xff]   ;;  %v2132_v3 = vrot.slane %v282_v54, %v286_v56  ;;  %v261_v4 = vld [vmem:[%s2095_s19 + $0x18] sm:$0xff]  ;;  %v271_v13 = vunpack.c.h.bf16 %v260_v0  ;;  %vm1353_vm11 = vcmp.lt.s32.totalorder %v2074_v40, 7 }
  0x19   : > { %1008 = vmatprep.subr.bf16.mxu1 %v1795_v21  ;;  %v2124_v60 = vrot.slane %v310_v55, %v290_v47  ;;  %v1839_v5 = vld [vmem:[%s2740_s3 + $0xc0] ss:$8 sps:$4 sm:$0xff]   ;;  %v1841_v9 = vld [vmem:[%s2740_s3 + $0xd4] ss:$8 sps:$4 sm:$0xff]   ;;  %v273_v14 = vunpack.c.h.bf16 %v261_v4  ;;  %v2151_v17 = vrot.slane %v310_v55, %v286_v56  ;;  %v1845_v18 = vld [vmem:[%s2740_s3 + $0xd0] ss:$8 sps:$4 sm:$0xff]  }
  0x1a   : > { %v295_v62 = vmul.f32 %v2122_v59, %v267_v53  ;;  %v297_v63 = vmul.f32 %v2122_v59, %v269_v58  ;;  %v1840_v6 = vld [vmem:[%s2740_s3 + $0x1c0] ss:$8 sps:$4 sm:$0xff]   ;;  %v1843_v10 = vld [vmem:[%s2740_s3 + $0x1d4] ss:$8 sps:$4 sm:$0xff]   ;;  %v294_v15 = vmul.f32 %v2132_v3, %v266_v1  ;;  %v296_v16 = vmul.f32 %v2132_v3, %v268_v2  ;;  %v1846_v19 = vld [vmem:[%s2740_s3 + $0x1d0] ss:$8 sps:$4 sm:$0xff]  }
  0x1b   : > { %703 = vmatpush1.bf16.msra.mxu0 %v1797_v22  ;;  %v1847_v21 = vld [vmem:[%s2740_s3 + $0xe4] ss:$8 sps:$4 sm:$0xff]   ;;  %v264_v53 = vld [vmem:[%s2095_s19 + $0x30] sm:$0xff]  ;;  %v1859_v58 = vld [vmem:[%s2740_s3 + $0x200] ss:$8 sps:$4 sm:$0xff]  }
  0x1c   : > { %1009 = vmatpush1.bf16.msra.mxu1 %v1798_v23  ;;  %704 = vmatprep.subr.bf16.mxu0 %v1799_v24  ;;  %v323_v7 = vadd.f32 %v2124_v60, %v295_v62  ;;  %v325_v8 = vadd.f32 %v2124_v60, %v297_v63  ;;  %v1849_v22 = vld [vmem:[%s2740_s3 + $0x1e4] ss:$8 sps:$4 sm:$0xff]   ;;  %v270_v23 = vunpack.c.l.bf16 %v260_v0  ;;  %v272_v24 = vunpack.c.l.bf16 %v261_v4 }
  0x1d   : > { %1010 = vmatprep.subr.bf16.mxu1 %v1801_v25  ;;  %v299_v25 = vmul.f32 %v2122_v59, %v271_v13  ;;  %v279_v0 = vunpack.c.h.bf16 %v264_v53 }
  0x1e   : > { %v339_v11 = vmax.f32 %v323_v7, 0.0  ;;  %v341_v12 = vmax.f32 %v325_v8, 0.0  ;;  %v300_v36 = vmul.f32 %v2132_v3, %v272_v24  ;;  %v1862_v8 = vld [vmem:[%s2740_s3 + $0x210] ss:$8 sps:$4 sm:$0xff]  }
  0x1f   : > { %705 = vmatpush1.bf16.msra.mxu0 %v1803_v26  ;;  %v301_v26 = vmul.f32 %v2122_v59, %v273_v14  ;;  %v307_v13 = vmul.f32 %v2122_v59, %v279_v0 }
  0x20   : > { %1011 = vmatpush1.bf16.msra.mxu1 %v1804_v27  ;;  %706 = vmatprep.subr.bf16.mxu0 %v1805_v28  ;;  %v2159_v20 = vpack.c.bf16 %v341_v12, %v339_v11  ;;  %v262_v27 = vld [vmem:[%s2095_s19 + $0x20] sm:$0xff]  ;;  %v322_v28 = vadd.f32 %v2151_v17, %v294_v15 }
  0x21   : > { %1012 = vmatprep.subr.bf16.mxu1 %v1807_v29  ;;  %v324_v29 = vadd.f32 %v2151_v17, %v296_v16  ;;  %v274_v55 = vunpack.c.l.bf16 %v262_v27 }
  0x22   : > { %724 = vmatprep.mubr.bf16.mxu0 %v2159_v20  ;;  %1030 = vmatprep.mubr.bf16.mxu1 %v2159_v20 }
  0x23   : > { %707 = vmatpush1.bf16.msra.mxu0 %v1809_v30  ;;  %v263_v30 = vld [vmem:[%s2095_s19 + $0x28] sm:$0xff] }
  0x24   : > { %1013 = vmatpush1.bf16.msra.mxu1 %v1810_v31  ;;  %708 = vmatprep.subr.bf16.mxu0 %v1811_v32  ;;  %v1851_v31 = vld [vmem:[%s2740_s3 + $0xe0] ss:$8 sps:$4 sm:$0xff]   ;;  %v276_v56 = vunpack.c.l.bf16 %v263_v30 }
  0x25   : > { %1014 = vmatprep.subr.bf16.mxu1 %v1813_v33  ;;  %v1852_v32 = vld [vmem:[%s2740_s3 + $0x1e0] ss:$8 sps:$4 sm:$0xff]   ;;  %v1853_v33 = vld [vmem:[%s2740_s3 + $0xf4] ss:$8 sps:$4 sm:$0xff]  }
  0x26   : > { %v304_v7 = vmul.f32 %v2132_v3, %v276_v56  ;;  %v1898_v56 = vld [vmem:[%s2740_s3 + $0x2d0] ss:$8 sps:$4 sm:$0xff]  }
  0x27   : > { %709 = vmatpush1.bf16.msra.mxu0 %v1815_v34  ;;  %v1855_v34 = vld [vmem:[%s2740_s3 + $0x1f4] ss:$8 sps:$4 sm:$0xff]  }
  0x28   : > { %1015 = vmatpush1.bf16.msra.mxu1 %v1816_v35  ;;  %710 = vmatprep.subr.bf16.mxu0 %v1817_v37  ;;  %v298_v35 = vmul.f32 %v2132_v3, %v270_v23  ;;  %v327_v37 = vadd.f32 %v2124_v60, %v299_v25  ;;  %v332_v16 = vadd.f32 %v2151_v17, %v304_v7 }
  0x29   : > { %1016 = vmatprep.subr.bf16.mxu1 %v1819_v38  ;;  %v329_v38 = vadd.f32 %v2124_v60, %v301_v26 }
  0x2a   : > { %v326_v47 = vadd.f32 %v2151_v17, %v298_v35  ;;  %v348_v26 = vmax.f32 %v332_v16, 0.0  ;;  %v1876_v35 = vld [vmem:[%s2740_s3 + $0x254] ss:$8 sps:$4 sm:$0xff]  }
  0x2b   : > { %711 = vmatpush1.bf16.msra.mxu0 %v1821_v39  ;;  %v275_v39 = vunpack.c.h.bf16 %v262_v27 }
  0x2c   : > { %1017 = vmatpush1.bf16.msra.mxu1 %v1822_v41  ;;  %712 = vmatprep.subr.bf16.mxu0 %v1823_v42  ;;  %v277_v41 = vunpack.c.h.bf16 %v263_v30  ;;  %v338_v42 = vmax.f32 %v322_v28, 0.0  ;;  %v342_v62 = vmax.f32 %v326_v47, 0.0  ;;  %v1888_v47 = vld [vmem:[%s2740_s3 + $0x294] ss:$8 sps:$4 sm:$0xff]  }
  0x2d   : > { %1018 = vmatprep.subr.bf16.mxu1 %v1825_v43  ;;  %v340_v43 = vmax.f32 %v324_v29, 0.0  ;;  %v303_v51 = vmul.f32 %v2122_v59, %v275_v39  ;;  %v1868_v29 = vld [vmem:[%s2740_s3 + $0x230] ss:$8 sps:$4 sm:$0xff]   ;;  %v1879_v39 = vld [vmem:[%s2740_s3 + $0x264] ss:$8 sps:$4 sm:$0xff]  }
  0x2e   : > { %v305_v52 = vmul.f32 %v2122_v59, %v277_v41 }
  0x2f   : > { %713 = vmatpush1.bf16.msra.mxu0 %v1827_v44  ;;  %v1857_v44 = vld [vmem:[%s2740_s3 + $0xf0] ss:$8 sps:$4 sm:$0xff]   ;;  %v2205_v54 = vpack.c.bf16 %v340_v43, %v338_v42  ;;  %v331_v2 = vadd.f32 %v2124_v60, %v303_v51  ;;  %v1877_v42 = vld [vmem:[%s2740_s3 + $0x260] ss:$8 sps:$4 sm:$0xff]   ;;  %v1882_v43 = vld [vmem:[%s2740_s3 + $0x274] ss:$8 sps:$4 sm:$0xff]  }
  0x30   : > { %1019 = vmatpush1.bf16.msra.mxu1 %v1828_v45  ;;  %714 = vmatprep.subr.bf16.mxu0 %v1829_v46  ;;  %v1858_v45 = vld [vmem:[%s2740_s3 + $0x1f0] ss:$8 sps:$4 sm:$0xff]   ;;  %v1861_v46 = vld [vmem:[%s2740_s3 + $0x204] ss:$8 sps:$4 sm:$0xff]   ;;  %v333_v4 = vadd.f32 %v2124_v60, %v305_v52 }
  0x31   : > { %1020 = vmatprep.subr.bf16.mxu1 %v1831_v48  ;;  %v328_v48 = vadd.f32 %v2151_v17, %v300_v36  ;;  %v347_v11 = vmax.f32 %v331_v2, 0.0  ;;  %v1892_v51 = vld [vmem:[%s2740_s3 + $0x2b0] ss:$8 sps:$4 sm:$0xff]   ;;  %v1897_v52 = vld [vmem:[%s2740_s3 + $0x2c4] ss:$8 sps:$4 sm:$0xff]  }
  0x32   : > { %v349_v12 = vmax.f32 %v333_v4, 0.0 }
  0x33   : > { %715 = vmatpush1.bf16.msra.mxu0 %v1833_v49  ;;  %v343_v49 = vmax.f32 %v327_v37, 0.0  ;;  %v344_v63 = vmax.f32 %v328_v48, 0.0  ;;  %v1886_v48 = vld [vmem:[%s2740_s3 + $0x290] ss:$8 sps:$4 sm:$0xff]  }
  0x34   : > { %1021 = vmatpush1.bf16.msra.mxu1 %v1834_v50  ;;  %716 = vmatprep.subr.bf16.mxu0 %v1835_v57  ;;  %v345_v50 = vmax.f32 %v329_v38, 0.0  ;;  %v265_v57 = vld [vmem:[%s2095_s19 + $0x38] sm:$0xff]  ;;  %v359_v23 = vpack.c.bf16 %v349_v12, %v347_v11  ;;  %v2364_v12 = vadd.s32 24, %v2074_v40 }
  0x35   : > { %1022 = vmatprep.subr.bf16.mxu1 %v1837_v61  ;;  %v1864_v61 = vld [vmem:[%s2740_s3 + $0x214] ss:$8 sps:$4 sm:$0xff]  }
  0x36   : > { %v2214_v1 = vpack.c.bf16 %v345_v50, %v343_v49  ;;  %v1889_v49 = vld [vmem:[%s2740_s3 + $0x2a0] ss:$8 sps:$4 sm:$0xff]   ;;  %v1894_v50 = vld [vmem:[%s2740_s3 + $0x2b4] ss:$8 sps:$4 sm:$0xff]  }
  0x37   : > { %717 = vmatpush1.bf16.msra.mxu0 %v1839_v5  ;;  %v281_v5 = vunpack.c.h.bf16 %v265_v57 }
  0x38   : > { %1023 = vmatpush1.bf16.msra.mxu1 %v1840_v6  ;;  %718 = vmatprep.subr.bf16.mxu0 %v1841_v9  ;;  %v302_v6 = vmul.f32 %v2132_v3, %v274_v55  ;;  %v2225_v9 = vpack.c.bf16 %v344_v63, %v342_v62  ;;  %v1900_v55 = vld [vmem:[%s2740_s3 + $0x2d4] ss:$8 sps:$4 sm:$0xff]   ;;  %v1904_v62 = vld [vmem:[%s2740_s3 + $0x2f0] ss:$8 sps:$4 sm:$0xff]   ;;  %v2345_v63 = vadd.s32 8, %v2074_v40 }
  0x39   : > { %1024 = vmatprep.subr.bf16.mxu1 %v1843_v10  ;;  %v1867_v10 = vld [vmem:[%s2740_s3 + $0x224] ss:$8 sps:$4 sm:$0xff]   ;;  %v309_v14 = vmul.f32 %v2122_v59, %v281_v5  ;;  %v335_v59 = vadd.f32 %v2124_v60, %v307_v13 }
  0x3a   : > { %v330_v15 = vadd.f32 %v2151_v17, %v302_v6  ;;  %v382_v0 = vand.u32 7, %v2345_v63  ;;  %v2358_v6 = vadd.s32 16, %v2074_v40 }
  0x3b   : > { %719 = vmatpush1.bf16.msra.mxu0 %v1845_v18  ;;  %v278_v18 = vunpack.c.l.bf16 %v264_v53  ;;  %v337_v24 = vadd.f32 %v2124_v60, %v309_v14  ;;  %v1873_v60 = vld [vmem:[%s2740_s3 + $0x244] ss:$8 sps:$4 sm:$0xff]   ;;  %v351_v30 = vmax.f32 %v335_v59, 0.0  ;;  %v1895_v53 = vld [vmem:[%s2740_s3 + $0x2c0] ss:$8 sps:$4 sm:$0xff]  }
  0x3c   : > { %1025 = vmatpush1.bf16.msra.mxu1 %v1846_v19  ;;  %720 = vmatprep.subr.bf16.mxu0 %v1847_v21  ;;  %v280_v19 = vunpack.c.l.bf16 %v265_v57  ;;  %v1865_v21 = vld [vmem:[%s2740_s3 + $0x220] ss:$8 sps:$4 sm:$0xff]   ;;  %v346_v25 = vmax.f32 %v330_v15, 0.0  ;;  %v1903_v57 = vld [vmem:[%s2740_s3 + $0x2e4] ss:$8 sps:$4 sm:$0xff]   ;;  %vm799_vm1 = vcmp.eq.s32.totalorder %v382_v0, 0 }
  0x3d   : > { %1026 = vmatprep.subr.bf16.mxu1 %v1849_v22  ;;  %v1870_v22 = vld [vmem:[%s2740_s3 + $0x234] ss:$8 sps:$4 sm:$0xff]   ;;  %v306_v27 = vmul.f32 %v2132_v3, %v278_v18  ;;  %v389_v16 = vand.u32 7, %v2358_v6  ;;  %vm2535_vm9 = vcmp.eq.s32.totalorder %v382_v0, 7 }
  0x3e   : > { %v308_v28 = vmul.f32 %v2132_v3, %v280_v19 }
  0x3f   : > { %721 = vmatpush1.bf16.msra.mxu0 %v1851_v31  ;;  %v353_v31 = vmax.f32 %v337_v24, 0.0  ;;  %v334_v3 = vadd.f32 %v2151_v17, %v306_v27  ;;  %vm2383_vm2 = vcmp.eq.s32.totalorder %v389_v16, 0  ;;  %vm2561_vm13 = vcmp.eq.s32.totalorder %v389_v16, 7 }
  0x40   : > { %1027 = vmatpush1.bf16.msra.mxu1 %v1852_v32  ;;  %722 = vmatprep.subr.bf16.mxu0 %v1853_v33  ;;  %v2254_v32 = vpack.c.bf16 %v348_v26, %v346_v25  ;;  %v336_v33 = vadd.f32 %v2151_v17, %v308_v28  ;;  %v1874_v17 = vld [vmem:[%s2740_s3 + $0x250] ss:$8 sps:$4 sm:$0xff]  }
  0x41   : > { %1028 = vmatprep.subr.bf16.mxu1 %v1855_v34  ;;  %v1871_v34 = vld [vmem:[%s2740_s3 + $0x240] ss:$8 sps:$4 sm:$0xff]   ;;  %v2264_v36 = vpack.c.bf16 %v353_v31, %v351_v30  ;;  %v350_v37 = vmax.f32 %v334_v3, 0.0 }
  0x42   : > { %v352_v38 = vmax.f32 %v336_v33, 0.0 }
  0x43   : > { %723 = vmatpush1.bf16.msra.mxu0 %v1857_v44  ;;  %v1880_v44 = vld [vmem:[%s2740_s3 + $0x270] ss:$8 sps:$4 sm:$0xff]  }
  0x44   : > { %1029 = vmatpush1.bf16.msra.mxu1 %v1858_v45  ;;  %1264 = vmatprep.subr.bf16.mxu0 %v1861_v46  ;;  %v2276_v41 = vpack.c.bf16 %v352_v38, %v350_v37  ;;  %v1885_v45 = vld [vmem:[%s2740_s3 + $0x284] ss:$8 sps:$4 sm:$0xff]   ;;  %v2399_v37 = vadd.s32 40, %v2074_v40 }
  0x45   : > { %1723 = vmatprep.subr.bf16.mxu1 %v1861_v46  ;;  %v1883_v46 = vld [vmem:[%s2740_s3 + $0x280] ss:$8 sps:$4 sm:$0xff]  }
  0x46   : > { %725 = vmatmul.mubr.bf16.vlgmr.msra.gmra.mrb[0].mxu0 %v2205_v54 }
  0x47   : > { %1031 = vmatmul.mubr.bf16.vlgmr.msra.gmra.mrb[0].mxu1 %v2205_v54  ;;  %1265 = vmatpush1.bf16.msra.mxu0 %v1859_v58 }
  0x48   : > { %1739 = vmatpush1.bf16.msra.mxu1 %v1859_v58  ;;  %1266 = vmatprep.subr.bf16.mxu0 %v1864_v61  ;;  %v1901_v58 = vld [vmem:[%s2740_s3 + $0x2e0] ss:$8 sps:$4 sm:$0xff]  }
  0x49   : > { %1724 = vmatprep.subr.bf16.mxu1 %v1864_v61  ;;  %734 = vmatprep.mubr.bf16.mxu0 %v2214_v1  ;;  %v1906_v61 = vld [vmem:[%s2740_s3 + $0x2f4] ss:$8 sps:$4 sm:$0xff]  }
  0x4a   : > { %1040 = vmatprep.mubr.bf16.mxu1 %v2214_v1 }
  0x4b   : > { %1267 = vmatpush1.bf16.msra.mxu0 %v1862_v8 }
  0x4c   : > { %1740 = vmatpush1.bf16.msra.mxu1 %v1862_v8  ;;  %1268 = vmatprep.subr.bf16.mxu0 %v1867_v10 }
  0x4d   : > { %1725 = vmatprep.subr.bf16.mxu1 %v1867_v10 }
  0x4e   : > { %735 = vmatmul.mubr.bf16.gmra.mrb[4].mxu0 %v2225_v9 }
  0x4f   : > { %1041 = vmatmul.mubr.bf16.gmra.mrb[4].mxu1 %v2225_v9  ;;  %1269 = vmatpush1.bf16.msra.mxu0 %v1865_v21 }
  0x50   : > { %1741 = vmatpush1.bf16.msra.mxu1 %v1865_v21  ;;  %1270 = vmatprep.subr.bf16.mxu0 %v1870_v22 }
  0x51   : > { %1726 = vmatprep.subr.bf16.mxu1 %v1870_v22  ;;  %744 = vmatprep.mubr.bf16.mxu0 %v359_v23 }
  0x52   : > { %1050 = vmatprep.mubr.bf16.mxu1 %v359_v23 }
  0x53   : > { %1271 = vmatpush1.bf16.msra.mxu0 %v1868_v29 }
  0x54   : > { %1742 = vmatpush1.bf16.msra.mxu1 %v1868_v29  ;;  %1272 = vmatprep.subr.bf16.mxu0 %v1873_v60 }
  0x55   : > { %1727 = vmatprep.subr.bf16.mxu1 %v1873_v60  ;;  %v2388_v60 = vadd.s32 32, %v2074_v40 }
  0x56   : > { %745 = vmatmul.mubr.bf16.gmra.mrb[8].mxu0 %v2254_v32 }
  0x57   : > { %1051 = vmatmul.mubr.bf16.gmra.mrb[8].mxu1 %v2254_v32  ;;  %1273 = vmatpush1.bf16.msra.mxu0 %v1871_v34 }
  0x58   : > { %1743 = vmatpush1.bf16.msra.mxu1 %v1871_v34  ;;  %1274 = vmatprep.subr.bf16.mxu0 %v1876_v35 }
  0x59   : > { %1728 = vmatprep.subr.bf16.mxu1 %v1876_v35  ;;  %754 = vmatprep.mubr.bf16.mxu0 %v2264_v36 }
  0x5a   : > { %1060 = vmatprep.mubr.bf16.mxu1 %v2264_v36 }
  0x5b   : > { %1275 = vmatpush1.bf16.msra.mxu0 %v1874_v17 }
  0x5c   : > { %1744 = vmatpush1.bf16.msra.mxu1 %v1874_v17  ;;  %1276 = vmatprep.subr.bf16.mxu0 %v1879_v39 }
  0x5d   : > { %1729 = vmatprep.subr.bf16.mxu1 %v1879_v39 }
  0x5e   : > { %755 = vmatmul.mubr.bf16.gmra.mrb[12].mxu0 %v2276_v41 }
  0x5f   : > { %1061 = vmatmul.mubr.bf16.gmra.mrb[12].mxu1 %v2276_v41  ;;  %1277 = vmatpush1.bf16.msra.mxu0 %v1877_v42 }
  0x60   : > { %1745 = vmatpush1.bf16.msra.mxu1 %v1877_v42  ;;  %1278 = vmatprep.subr.bf16.mxu0 %v1882_v43 }
  0x61   : > { %1730 = vmatprep.subr.bf16.mxu1 %v1882_v43  ;;  %1296 = vmatprep.mubr.bf16.mxu0 %v2159_v20  ;;  %v1891_v20 = vld [vmem:[%s2740_s3 + $0x2a4] ss:$8 sps:$4 sm:$0xff]  }
  0x62   : > { %1316 = vmatprep.mubr.bf16.mxu1 %v359_v23  ;;  %v396_v23 = vand.u32 7, %v2364_v12 }
  0x63   : > { %1279 = vmatpush1.bf16.msra.mxu0 %v1880_v44 }
  0x64   : > { %1746 = vmatpush1.bf16.msra.mxu1 %v1880_v44  ;;  %1280 = vmatprep.subr.bf16.mxu0 %v1885_v45  ;;  %vm2394_vm3 = vcmp.eq.s32.totalorder %v396_v23, 0  ;;  %v403_v44 = vand.u32 7, %v2388_v60  ;;  %vm2569_vm14 = vcmp.eq.s32.totalorder %v396_v23, 7 }
  0x65   : > { %1731 = vmatprep.subr.bf16.mxu1 %v1885_v45 }
  0x66   : > { %vm2427_vm4 = vcmp.eq.s32.totalorder %v403_v44, 0  ;;  %vm2541_vm10 = vcmp.eq.s32.totalorder %v403_v44, 7 }
  0x67   : > { %1281 = vmatpush1.bf16.msra.mxu0 %v1883_v46 }
  0x68   : > { %1747 = vmatpush1.bf16.msra.mxu1 %v1883_v46  ;;  %1282 = vmatprep.subr.bf16.mxu0 %v1888_v47 }
  0x69   : > { %1732 = vmatprep.subr.bf16.mxu1 %v1888_v47 }
  0x6b   : > { %1283 = vmatpush1.bf16.msra.mxu0 %v1886_v48 }
  0x6c   : > { %1748 = vmatpush1.bf16.msra.mxu1 %v1886_v48  ;;  %1284 = vmatprep.subr.bf16.mxu0 %v1891_v20 }
  0x6d   : > { %1733 = vmatprep.subr.bf16.mxu1 %v1891_v20 }
  0x6f   : > { %1285 = vmatpush1.bf16.msra.mxu0 %v1889_v49 }
  0x70   : > { %1749 = vmatpush1.bf16.msra.mxu1 %v1889_v49  ;;  %1286 = vmatprep.subr.bf16.mxu0 %v1894_v50  ;;  %v410_v49 = vand.u32 7, %v2399_v37 }
  0x71   : > { %1734 = vmatprep.subr.bf16.mxu1 %v1894_v50 }
  0x72   : > { %vm2438_vm5 = vcmp.eq.s32.totalorder %v410_v49, 0  ;;  %vm2575_vm15 = vcmp.eq.s32.totalorder %v410_v49, 7  ;;  %v1434_v49 = vld [vmem:[%s2555_s16 + $0x40] sm:$0xff] }
  0x73   : > { %1287 = vmatpush1.bf16.msra.mxu0 %v1892_v51 }
  0x74   : > { %1750 = vmatpush1.bf16.msra.mxu1 %v1892_v51  ;;  %1288 = vmatprep.subr.bf16.mxu0 %v1897_v52 }
  0x75   : > { %1735 = vmatprep.subr.bf16.mxu1 %v1897_v52 }
  0x77   : > { %1289 = vmatpush1.bf16.msra.mxu0 %v1895_v53 }
  0x78   : > { %1751 = vmatpush1.bf16.msra.mxu1 %v1895_v53  ;;  %1290 = vmatprep.subr.bf16.mxu0 %v1900_v55 }
  0x79   : > { %1736 = vmatprep.subr.bf16.mxu1 %v1900_v55 }
  0x7b   : > { %1291 = vmatpush1.bf16.msra.mxu0 %v1898_v56 }
  0x7c   : > { %1752 = vmatpush1.bf16.msra.mxu1 %v1898_v56  ;;  %1292 = vmatprep.subr.bf16.mxu0 %v1903_v57 }
  0x7d   : > { %1737 = vmatprep.subr.bf16.mxu1 %v1903_v57 }
  0x7f   : > { %1293 = vmatpush1.bf16.msra.mxu0 %v1901_v58 }
  0x80   : > { %1753 = vmatpush1.bf16.msra.mxu1 %v1901_v58  ;;  %1294 = vmatprep.subr.bf16.mxu0 %v1906_v61  ;;  %v2432_v58 = vadd.s32 48, %v2074_v40 }
  0x81   : > { %1738 = vmatprep.subr.bf16.mxu1 %v1906_v61 }
  0x83   : > { %1295 = vmatpush1.bf16.msra.mxu0 %v1904_v62 }
  0x84   : > { %1754 = vmatpush1.bf16.msra.mxu1 %v1904_v62 }
  0x86   : > { %1297 = vmatmul.mubr.bf16.vlgmr.msra.gmra.mrb[16].mxu0 %v2205_v54 }
  0x87   : > { %1317 = vmatmul.mubr.bf16.vlgmr.msra.gmra.mrb[16].mxu1 %v2254_v32  ;;  %1306 = vmatprep.mubr.bf16.mxu0 %v2214_v1 }
  0x88   : > { %1326 = vmatprep.mubr.bf16.mxu1 %v2264_v36 }
  0x8e   : > { %1307 = vmatmul.mubr.bf16.gmra.mrb[20].mxu0 %v2225_v9 }
  0x8f   : > { %1327 = vmatmul.mubr.bf16.gmra.mrb[20].mxu1 %v2276_v41 }
 0x119   : > { %v2348_v2 = vpop.f32.mrb[0].mxu0 }
 0x11a   : > { %v2350_v4 = vpop.f32.mrb[0].mxu1  ;;  %v765_v54 = vrot.slane %v2348_v2, 7  ;;  %v2353_v5 = vpop.f32.mrb[1].mxu0 }
 0x11b   : > { %v2355_v1 = vpop.f32.mrb[1].mxu1  ;;  %v730_v7 = vpop.f32.mrb[2].mxu0  ;;  %v766_v13 = vrot.slane %v2353_v5, 7 }
 0x11c   : > { %v1036_v8 = vpop.f32.mrb[2].mxu1  ;;  %v767_v9 = vrot.slane %v730_v7, 7  ;;  %v732_v10 = vpop.f32.mrb[3].mxu0 }
 0x11d   : > { %v1038_v11 = vpop.f32.mrb[3].mxu1  ;;  %v768_v14 = vrot.slane %v732_v10, 7 }
 0x11e   : > { %v794_v15 = vsel %vm781_vm0, %v765_v54, %v767_v9 }
 0x11f   : > { %v824_v18 = vsel %vm799_vm1, 0.0, %v794_v15  ;;  %v795_v19 = vsel %vm781_vm0, %v766_v13, %v768_v14  ;;  %v2443_v15 = vadd.s32 56, %v2074_v40 }
 0x120   : > { %v2376_v21 = vadd.f32 %v1036_v8, %v824_v18  ;;  %v825_v22 = vsel %vm799_vm1, 0.0, %v795_v19 }
 0x121   : > { %v2379_v59 = vadd.f32 %v1038_v11, %v825_v22  ;;  %v736_v24 = vpop.f32.mrb[4].mxu0 }
 0x122   : > { %v1042_v25 = vpop.f32.mrb[4].mxu1  ;;  %v769_v26 = vrot.slane %v736_v24, 7  ;;  %v738_v27 = vpop.f32.mrb[5].mxu0 }
 0x123   : > { %v1044_v29 = vpop.f32.mrb[5].mxu1  ;;  %v770_v30 = vrot.slane %v738_v27, 7  ;;  %v740_v31 = vpop.f32.mrb[6].mxu0  ;;  %v417_v27 = vand.u32 7, %v2432_v58 }
 0x124   : > { %v1046_v32 = vpop.f32.mrb[6].mxu1  ;;  %v792_v3 = vsel %vm781_vm0, %v767_v9, %v769_v26  ;;  %v771_v33 = vrot.slane %v740_v31, 7  ;;  %v742_v34 = vpop.f32.mrb[7].mxu0  ;;  %v375_v31 = vand.u32 7, %v2074_v40 }
 0x125   : > { %v1048_v36 = vpop.f32.mrb[7].mxu1  ;;  %v826_v38 = vsel %vm2383_vm2, 0.0, %v792_v3  ;;  %v793_v17 = vsel %vm781_vm0, %v768_v14, %v770_v30  ;;  %v772_v39 = vrot.slane %v742_v34, 7  ;;  %vm2472_vm6 = vcmp.eq.s32.totalorder %v417_v27, 0 }
 0x126   : > { %v2405_v41 = vadd.f32 %v1042_v25, %v826_v38  ;;  %v827_v42 = vsel %vm2383_vm2, 0.0, %v793_v17  ;;  %v790_v43 = vsel %vm781_vm0, %v769_v26, %v771_v33  ;;  %vm2476_vm7 = vcmp.eq.s32.totalorder %v375_v31, 0 }
 0x127   : > { %v2412_v45 = vadd.f32 %v1044_v29, %v827_v42  ;;  %v828_v46 = vsel %vm2394_vm3, 0.0, %v790_v43  ;;  %v791_v47 = vsel %vm781_vm0, %v770_v30, %v772_v39  ;;  %vm2546_vm12 = vcmp.eq.s32.totalorder %v375_v31, 7 }
 0x128   : > { %v2418_v48 = vadd.f32 %v1046_v32, %v828_v46  ;;  %v829_v20 = vsel %vm2394_vm3, 0.0, %v791_v47 }
 0x129   : > { %v746_v50 = vpop.f32.mrb[8].mxu0  ;;  %v2423_v51 = vadd.f32 %v1048_v36, %v829_v20 }
 0x12a   : > { %v1052_v52 = vpop.f32.mrb[8].mxu1  ;;  %v773_v53 = vrot.slane %v746_v50, 7  ;;  %v748_v55 = vpop.f32.mrb[9].mxu0 }
 0x12b   : > { %v1054_v57 = vpop.f32.mrb[9].mxu1  ;;  %v774_v61 = vrot.slane %v748_v55, 7  ;;  %v750_v62 = vpop.f32.mrb[10].mxu0 }
 0x12c   : > { %v1056_v7 = vpop.f32.mrb[10].mxu1  ;;  %v775_v8 = vrot.slane %v750_v62, 7  ;;  %v752_v9 = vpop.f32.mrb[11].mxu0  ;;  %v788_v10 = vsel %vm781_vm0, %v771_v33, %v773_v53  ;;  %v424_v33 = vand.u32 7, %v2443_v15 }
 0x12d   : > { %v1058_v14 = vpop.f32.mrb[11].mxu1  ;;  %v776_v18 = vrot.slane %v752_v9, 7  ;;  %v830_v19 = vsel %vm2427_vm4, 0.0, %v788_v10  ;;  %v789_v22 = vsel %vm781_vm0, %v772_v39, %v774_v61 }
 0x12e   : > { %v2449_v24 = vadd.f32 %v1052_v52, %v830_v19  ;;  %v831_v25 = vsel %vm2427_vm4, 0.0, %v789_v22  ;;  %v786_v26 = vsel %vm781_vm0, %v773_v53, %v775_v8  ;;  %vm2484_vm8 = vcmp.eq.s32.totalorder %v424_v33, 0 }
 0x12f   : > { %v2456_v28 = vadd.f32 %v1054_v57, %v831_v25  ;;  %v832_v29 = vsel %vm2438_vm5, 0.0, %v786_v26  ;;  %v787_v30 = vsel %vm781_vm0, %v774_v61, %v776_v18  ;;  %vm2623_vm1 = vcmp.eq.s32.totalorder %v424_v33, 7 }
 0x130   : > { %v2463_v32 = vadd.f32 %v1056_v7, %v832_v29  ;;  %v833_v3 = vsel %vm2438_vm5, 0.0, %v787_v30 }
 0x131   : > { %v756_v34 = vpop.f32.mrb[12].mxu0  ;;  %v2468_v35 = vadd.f32 %v1058_v14, %v833_v3 }
 0x132   : > { %v1062_v36 = vpop.f32.mrb[12].mxu1  ;;  %v777_v38 = vrot.slane %v756_v34, 7  ;;  %v758_v17 = vpop.f32.mrb[13].mxu0 }
 0x133   : > { %v1064_v42 = vpop.f32.mrb[13].mxu1  ;;  %v778_v43 = vrot.slane %v758_v17, 7  ;;  %v760_v46 = vpop.f32.mrb[14].mxu0 }
 0x134   : > { %v1066_v47 = vpop.f32.mrb[14].mxu1  ;;  %v779_v20 = vrot.slane %v760_v46, 7  ;;  %v762_v52 = vpop.f32.mrb[15].mxu0  ;;  %v784_v53 = vsel %vm781_vm0, %v775_v8, %v777_v38 }
 0x135   : > { %v1068_v56 = vpop.f32.mrb[15].mxu1  ;;  %v780_v57 = vrot.slane %v762_v52, 7  ;;  %v834_v61 = vsel %vm2472_vm6, 0.0, %v784_v53  ;;  %v785_v62 = vsel %vm781_vm0, %v776_v18, %v778_v43  ;;  %v1426_v52 = vld [vmem:[%s2555_s16] sm:$0xff] }
 0x136   : > { %v796_v7 = vsel %vm781_vm0, %v779_v20, %v765_v54  ;;  %v2496_v8 = vadd.f32 %v1062_v36, %v834_v61  ;;  %v835_v9 = vsel %vm2472_vm6, 0.0, %v785_v62  ;;  %v782_v10 = vsel %vm781_vm0, %v777_v38, %v779_v20  ;;  %v1427_v62 = vld [vmem:[%s2555_s16 + $0x8] sm:$0xff] }
 0x137   : > { %v822_v11 = vsel %vm2476_vm7, 0.0, %v796_v7  ;;  %v797_v2 = vsel %vm781_vm0, %v780_v57, %v766_v13  ;;  %v2508_v14 = vadd.f32 %v1064_v42, %v835_v9  ;;  %v836_v54 = vsel %vm2484_vm8, 0.0, %v782_v10  ;;  %v1435_v9 = vld [vmem:[%s2555_s16 + $0x48] sm:$0xff] }
 0x138   : > { %v1033_v18 = vadd.f32 %v2350_v4, %v822_v11  ;;  %v823_v19 = vsel %vm2476_vm7, 0.0, %v797_v2  ;;  %v2515_v22 = vadd.f32 %v1066_v47, %v836_v54  ;;  %v783_v25 = vsel %vm781_vm0, %v778_v43, %v780_v57 }
 0x139   : > { %v1035_v5 = vadd.f32 %v2355_v1, %v823_v19  ;;  %v837_v13 = vsel %vm2484_vm8, 0.0, %v783_v25  ;;  %vm2617_vm0 = vcmp.eq.s32.totalorder %v417_v27, 7 }
 0x13a   : > { %v2522_v26 = vadd.f32 %v1068_v56, %v837_v13 }
 0x159   : > { %v2525_v29 = vpop.f32.mrb[16].mxu0 }
 0x15a   : > { %v2527_v4 = vpop.f32.mrb[16].mxu1  ;;  %v2529_v30 = vpop.f32.mrb[17].mxu0  ;;  %v1337_v63 = vrot.slane %v2525_v29, 1  ;;  %v1438_v29 = vld [vmem:[%s2555_s16 + $0x60] sm:$0xff] }
 0x15b   : > { %v2531_v3 = vpop.f32.mrb[17].mxu1  ;;  %v1302_v36 = vpop.f32.mrb[18].mxu0  ;;  %v1345_v0 = vrot.slane %v2527_v4, 1  ;;  %v1338_v43 = vrot.slane %v2529_v30, 1  ;;  %v1439_v30 = vld [vmem:[%s2555_s16 + $0x68] sm:$0xff] }
 0x15c   : > { %v1322_v17 = vpop.f32.mrb[18].mxu1  ;;  %v1339_v60 = vrot.slane %v1302_v36, 1  ;;  %v1304_v39 = vpop.f32.mrb[19].mxu0  ;;  %v1346_v46 = vrot.slane %v2531_v3, 1  ;;  %v1433_v3 = vld [vmem:[%s2555_s16 + $0x38] sm:$0xff] }
 0x15d   : > { %v1347_v44 = vrot.slane %v1322_v17, 1  ;;  %v1324_v31 = vpop.f32.mrb[19].mxu1  ;;  %v1340_v47 = vrot.slane %v1304_v39, 1 }
 0x15e   : > { %v1348_v20 = vrot.slane %v1324_v31, 1  ;;  %v1366_v16 = vsel %vm1353_vm11, %v1337_v63, %v1339_v60 }
 0x15f   : > { %v1358_v12 = vsel %vm1353_vm11, %v1345_v0, %v1347_v44  ;;  %v1394_v23 = vsel %vm2546_vm12, 0.0, %v1366_v16  ;;  %v1367_v53 = vsel %vm1353_vm11, %v1338_v43, %v1340_v47 }
 0x160   : > { %v1402_v37 = vsel %vm2541_vm10, 0.0, %v1358_v12  ;;  %v1359_v55 = vsel %vm1353_vm11, %v1346_v46, %v1348_v20  ;;  %v1410_v56 = vadd.f32 %v1394_v23, %v1033_v18  ;;  %v1395_v61 = vsel %vm2546_vm12, 0.0, %v1367_v53  ;;  %v1436_v53 = vld [vmem:[%s2555_s16 + $0x50] sm:$0xff] }
 0x161   : > { %v1418_v57 = vadd.f32 %v1402_v37, %v2449_v24  ;;  %v1403_v7 = vsel %vm2541_vm10, 0.0, %v1359_v55  ;;  %v1411_v11 = vadd.f32 %v1395_v61, %v1035_v5  ;;  %v1308_v54 = vpop.f32.mrb[20].mxu0  ;;  %v1428_v37 = vld [vmem:[%s2555_s16 + $0x10] sm:$0xff]  ;;  %v1429_v61 = vld [vmem:[%s2555_s16 + $0x18] sm:$0xff] }
 0x162   : > { %v1419_v2 = vadd.f32 %v1403_v7, %v2456_v28  ;;  %v1328_v18 = vpop.f32.mrb[20].mxu1  ;;  %v1442_v19 = vadd.f32 %v1426_v52, %v1410_v56  ;;  %v1341_v58 = vrot.slane %v1308_v54, 1  ;;  %v2628_v13 = vpop.f32.mrb[21].mxu0 }
 0x163   : > { %v1450_v25 = vadd.f32 %v1434_v49, %v1418_v57  ;;  %v1349_v27 = vrot.slane %v1328_v18, 1  ;;  %v2630_v1 = vpop.f32.mrb[21].mxu1  ;;  %v1443_v15 = vadd.f32 %v1427_v62, %v1411_v11  ;;  %v1342_v5 = vrot.slane %v2628_v13, 1  ;;  %v1312_v36 = vpop.f32.mrb[22].mxu0  ;;  %v1430_v11 = vld [vmem:[%s2555_s16 + $0x20] sm:$0xff] }
 0x164   : > { %v1451_v33 = vadd.f32 %v1435_v9, %v1419_v2  ;;  %v1350_v28 = vrot.slane %v2630_v1, 1  ;;  %v1332_v38 = vpop.f32.mrb[22].mxu1  ;;  %1458 = vst [vmem:[%s2613_s21] sm:$0xff] %v1442_v19  ;;  %v1364_v17 = vsel %vm1353_vm11, %v1339_v60, %v1341_v58  ;;  %v1343_v31 = vrot.slane %v1312_v36, 1  ;;  %v1314_v12 = vpop.f32.mrb[23].mxu0 }
 0x165   : > { %1466 = vst [vmem:[%s2613_s21 + $0x40] sm:$0xff] %v1450_v25  ;;  %v1356_v39 = vsel %vm1353_vm11, %v1347_v44, %v1349_v27  ;;  %v1351_v16 = vrot.slane %v1332_v38, 1  ;;  %v1334_v23 = vpop.f32.mrb[23].mxu1  ;;  %1459 = vst [vmem:[%s2613_s21 + $0x8] sm:$0xff] %v1443_v15  ;;  %v1396_v52 = vsel %vm2535_vm9, 0.0, %v1364_v17  ;;  %v1365_v60 = vsel %vm1353_vm11, %v1340_v47, %v1342_v5  ;;  %v1437_v47 = vld [vmem:[%s2555_s16 + $0x58] sm:$0xff] }
 0x166   : > { %1467 = vst [vmem:[%s2613_s21 + $0x48] sm:$0xff] %v1451_v33  ;;  %v1404_v49 = vsel %vm2575_vm15, 0.0, %v1356_v39  ;;  %v1357_v44 = vsel %vm1353_vm11, %v1348_v20, %v1350_v28  ;;  %v1412_v55 = vadd.f32 %v1396_v52, %v2376_v21  ;;  %v1397_v57 = vsel %vm2535_vm9, 0.0, %v1365_v60  ;;  %v1440_v15 = vld [vmem:[%s2555_s16 + $0x70] sm:$0xff] }
 0x167   : > { %v1420_v56 = vadd.f32 %v1404_v49, %v2463_v32  ;;  %v1405_v62 = vsel %vm2575_vm15, 0.0, %v1357_v44  ;;  %v1413_v7 = vadd.f32 %v1397_v57, %v2379_v59  ;;  %v1360_v21 = vsel %vm1353_vm11, %v1343_v31, %v1345_v0 }
 0x168   : > { %v1421_v9 = vadd.f32 %v1405_v62, %v2468_v35  ;;  %v1362_v32 = vsel %vm1353_vm11, %v1341_v58, %v1343_v31  ;;  %v1444_v34 = vadd.f32 %v1428_v37, %v1412_v55  ;;  %v1400_v59 = vsel %vm2569_vm14, 0.0, %v1360_v21  ;;  %v1432_v35 = vld [vmem:[%s2555_s16 + $0x30] sm:$0xff] }
 0x169   : > { %v1452_v20 = vadd.f32 %v1436_v53, %v1420_v56  ;;  %v1398_v6 = vsel %vm2561_vm13, 0.0, %v1362_v32  ;;  %v1445_v2 = vadd.f32 %v1429_v61, %v1413_v7  ;;  %v1416_v54 = vadd.f32 %v1400_v59, %v2418_v48 }
 0x16a   : > { %v1453_v4 = vadd.f32 %v1437_v47, %v1421_v9  ;;  %v1414_v0 = vadd.f32 %v1398_v6, %v2405_v41  ;;  %1460 = vst [vmem:[%s2613_s21 + $0x10] sm:$0xff] %v1444_v34  ;;  %v1354_v18 = vsel %vm1353_vm11, %v1349_v27, %v1351_v16  ;;  %v1368_v19 = vsel %vm1353_vm11, %v1351_v16, %v1337_v63  ;;  %v1441_v16 = vld [vmem:[%s2555_s16 + $0x78] sm:$0xff] }
 0x16b   : > { %1468 = vst [vmem:[%s2613_s21 + $0x50] sm:$0xff] %v1452_v20  ;;  %v1344_v25 = vrot.slane %v1314_v12, 1  ;;  %v1352_v58 = vrot.slane %v1334_v23, 1  ;;  %1461 = vst [vmem:[%s2613_s21 + $0x18] sm:$0xff] %v1445_v2  ;;  %v1448_v48 = vadd.f32 %v1432_v35, %v1416_v54  ;;  %v1406_v13 = vsel %vm2617_vm0, 0.0, %v1354_v18 }
 0x16c   : > { %1469 = vst [vmem:[%s2613_s21 + $0x58] sm:$0xff] %v1453_v4  ;;  %v1446_v41 = vadd.f32 %v1430_v11, %v1414_v0  ;;  %v1408_v27 = vsel %vm2623_vm1, 0.0, %v1368_v19  ;;  %v1422_v33 = vadd.f32 %v1406_v13, %v2496_v8 }
 0x16d   : > { %v1424_v63 = vadd.f32 %v1408_v27, %v2515_v22  ;;  %v1361_v36 = vsel %vm1353_vm11, %v1344_v25, %v1346_v46  ;;  %v1363_v38 = vsel %vm1353_vm11, %v1342_v5, %v1344_v25  ;;  %1464 = vst [vmem:[%s2613_s21 + $0x30] sm:$0xff] %v1448_v48  ;;  %v1431_v22 = vld [vmem:[%s2555_s16 + $0x28] sm:$0xff]  ;;  %v1355_v46 = vsel %vm1353_vm11, %v1350_v28, %v1352_v58 }
 0x16e   : > { %1462 = vst [vmem:[%s2613_s21 + $0x20] sm:$0xff] %v1446_v41  ;;  %v1399_v17 = vsel %vm2561_vm13, 0.0, %v1363_v38  ;;  %v1401_v8 = vsel %vm2569_vm14, 0.0, %v1361_v36  ;;  %v1369_v5 = vsel %vm1353_vm11, %v1352_v58, %v1338_v43  ;;  %v1454_v42 = vadd.f32 %v1438_v29, %v1422_v33 }
 0x16f   : > { %v1456_v39 = vadd.f32 %v1440_v15, %v1424_v63  ;;  %v1415_v31 = vadd.f32 %v1399_v17, %v2412_v45  ;;  %v1417_v50 = vadd.f32 %v1401_v8, %v2423_v51  ;;  %v1407_v1 = vsel %vm2617_vm0, 0.0, %v1355_v46 }
 0x170   : > { %v1409_v28 = vsel %vm2623_vm1, 0.0, %v1369_v5  ;;  %1470 = vst [vmem:[%s2613_s21 + $0x60] sm:$0xff] %v1454_v42  ;;  %v1423_v12 = vadd.f32 %v1407_v1, %v2508_v14 }
 0x171   : > { %1472 = vst [vmem:[%s2613_s21 + $0x70] sm:$0xff] %v1456_v39  ;;  %v1447_v40 = vadd.f32 %v1431_v22, %v1415_v31  ;;  %v1449_v43 = vadd.f32 %v1433_v3, %v1417_v50  ;;  %v1425_v45 = vadd.f32 %v1409_v28, %v2522_v26 }
 0x172   : > { %v1455_v51 = vadd.f32 %v1439_v30, %v1423_v12 }
 0x173   : > { %1463 = vst [vmem:[%s2613_s21 + $0x28] sm:$0xff] %v1447_v40  ;;  %1465 = vst [vmem:[%s2613_s21 + $0x38] sm:$0xff] %v1449_v43  ;;  %v1457_v23 = vadd.f32 %v1441_v16, %v1425_v45 }
 0x174   : > { %1471 = vst [vmem:[%s2613_s21 + $0x68] sm:$0xff] %v1455_v51 }
 0x175   : > { %1473 = vst [vmem:[%s2613_s21 + $0x78] sm:$0xff] %v1457_v23 }
 0x176 PF: > { %s15_s18 = sadd.s32 1, %s1913_s18  }
 0x177   : > { %p12_p4 = scmp.ge.s32.totalorder %s15_s18, 4  }
 0x179   :  { %14 = sbr.rel (!%p12_p4) target bundleno = 1 (0x1), region = 75 }

</bundles_post_ra>
